<compile_context>
chip_gen: v7x
topology: tpu7x:2x2x1
jax: 0.10.0
libtpu: 0.0.40
codegen_flags: <defaults>
</compile_context>

<pallas_src>
import functools

import jax
import jax.numpy as jnp
import numpy as np
from jax.experimental import pallas as pl
from jax.experimental.pallas import tpu as pltpu


def _st_gcn_kernel(x_ref, Abd_ref, Wbig_ref, Wtcn_ref, Wse_ref, pool_ref, expand_ref,
                   bias_ref, o_ref, *, NBV, TC, K):
    # x block: (NB*V, T*Cin) -- NB samples stacked row-wise, lane dim = T*Cin.
    x2 = x_ref[...]

    # ---- one fused matmul: K GCN branches + residual branch + SE pooling tap ----
    y = jnp.dot(x2, Wbig_ref[...], preferred_element_type=jnp.float32)   # (NBV, (K+2)*TC)

    # ---- graph conv 'nkctv,kvw->nctw' as K accumulated dots (no concatenate) ----
    # Abd[k] = I_NB (x) A_k^T  (block-diagonal over the NB samples in this block).
    z = jnp.dot(Abd_ref[0], y[:, 0:TC], preferred_element_type=jnp.float32)
    for k in range(1, K):
        z = z + jnp.dot(Abd_ref[k], y[:, k * TC:(k + 1) * TC],
                        preferred_element_type=jnp.float32)               # (NBV, TC)

    # ---- BN1 (scale folded into weights; bias + graph-summed conv bias table) + ReLU ----
    h = jnp.maximum(z + bias_ref[0:NBV, :], 0.0)                           # (NBV, TC)

    # ---- temporal (kt,1) conv + conv bias + BN2: one banded lane->lane matmul ----
    tcn = (jnp.dot(h, Wtcn_ref[...], preferred_element_type=jnp.float32)
           + bias_ref[NBV:NBV + 1, :])                                     # (NBV, TC)

    # ---- residual 1x1 conv + BN (already inside y) ----
    r = y[:, K * TC:(K + 1) * TC] + bias_ref[NBV + 8:NBV + 9, :]           # (NBV, TC)

    # ---- Squeeze-and-Excitation: per-sample (T,V)-mean via tiny MXU dots ----
    # pool_ref folds the 1/V; the 1/T is folded into the SE-tap columns of Wbig.
    s = (jnp.dot(pool_ref[...], y[:, (K + 1) * TC:(K + 2) * TC],
                 preferred_element_type=jnp.float32)
         + bias_ref[NBV + 8:NBV + 9, :])                                   # (NB, TC), cols<Cout matter
    e = jax.nn.sigmoid(jnp.dot(s, Wse_ref[...], preferred_element_type=jnp.float32)
                       + bias_ref[NBV + 16:NBV + 17, :])                   # (NB, TC)
    # channel excitation -> (t, c) lane layout, then broadcast to the V rows of each sample
    e_row = jnp.dot(e, bias_ref[NBV + 24:NBV + 24 + TC, :],
                    preferred_element_type=jnp.float32)                    # (NB, TC)
    e_full = jnp.dot(expand_ref[...], e_row, preferred_element_type=jnp.float32)  # (NBV, TC)

    o_ref[...] = jnp.maximum(tcn + r * e_full, 0.0).astype(o_ref.dtype)


def st_gcn_forward(x_nctv, A, params, eps=1e-5, batch_block=None):
    """x_nctv: (N, C_in, T, V) float32, A: (K, V, V) float32 (PyTorch layout)."""
    N, Cin, T, V = x_nctv.shape
    K = A.shape[0]
    Cout = params['bg'].shape[0] // K
    kt = params['Wt'].shape[2]
    pad = (kt - 1) // 2
    TC = T * Cout
    TCin = T * Cin
    f32 = jnp.float32
    assert TC >= Cout

    # ---- batching: fill the MXU M dimension (NB*V ~= 128 rows; 256 for v6e at big N) ----
    if batch_block is None:
        batch_block = max(1, 128 // V)
    NB = max(1, min(batch_block, N))
    while NB > 1 and (NB * V) % 8 != 0:     # keep the row block sublane-aligned
        NB -= 1
    G = -(-N // NB)                          # grid length (>=2 at demo sizes -> both v7x TCs busy)
    N_pad = G * NB
    NBV = NB * V
    assert NBV % 8 == 0 or G == 1

    def fold_bn(gamma, beta, mean, var):
        s = gamma / jnp.sqrt(var + eps)
        return s, beta - mean * s

    # ---------- parameter folding / packing (vectorized, trace-time) ----------
    s1, b1 = fold_bn(*params['bn1'])
    s2, b2 = fold_bn(*params['bn2'])
    sr, brb = fold_bn(*params['bn_r'])

    Wg = params['Wg'][:, :, 0, 0].T * jnp.tile(s1, K)[None, :]   # (Cin, K*Cout), BN1 scale folded
    Wr = params['Wr'][:, :, 0, 0].T * sr[None, :]                # (Cin, Cout), residual BN folded
    br_fold = params['br'] * sr + brb                            # (Cout,)

    # Fused block-structured weight, columns (all 128-lane aligned when TC % 128 == 0):
    #   [k*TC, (k+1)*TC)        GCN branch k, (t, c) lane layout, block-diag over t
    #   [K*TC, (K+1)*TC)        residual branch
    #   [(K+1)*TC, (K+2)*TC)    SE pooling tap (mean over t folded in; only first Cout cols nonzero)
    eyeT = jnp.eye(T, dtype=f32)
    gcn_blocks = [jnp.kron(eyeT, Wg[:, k * Cout:(k + 1) * Cout]) for k in range(K)]
    res_block = jnp.kron(eyeT, Wr)
    se_block = jnp.concatenate(
        [jnp.tile(Wr / T, (T, 1)), jnp.zeros((TCin, TC - Cout), f32)], axis=1)
    Wbig = jnp.concatenate(gcn_blocks + [res_block, se_block], axis=1)    # (TCin, (K+2)*TC)

    # Block-diagonal graph matrices for the batched node rows: Abd[k] = I_NB (x) A_k^T.
    Abd = jnp.stack([jnp.kron(jnp.eye(NB, dtype=f32), A[k].T) for k in range(K)])  # (K, NBV, NBV)

    # Banded temporal-conv weight (zero padding + BN2 scale folded in), vectorized build.
    Wt_taps = [params['Wt'][:, :, i, 0].T * s2[None, :] for i in range(kt)]
    Wtcn = sum(jnp.kron(jnp.eye(T, T, k=pad - i, dtype=f32), Wt_taps[i]) for i in range(kt))

    # Per-node BN1 bias table incl. graph-summed GCN conv bias, tiled along T and over NB samples.
    colsumA = jnp.sum(A, axis=1)                                   # (K, V): sum_v A[k, v, w]
    bg_kc = params['bg'].reshape(K, Cout) * s1[None, :]
    b1_vc = b1[None, :] + jnp.einsum('kw,kc->wc', colsumA, bg_kc)  # (V, Cout)
    b1_vtc = jnp.tile(b1_vc[:, None, :], (1, T, 1)).reshape(V, TC)
    b1_tab = jnp.tile(b1_vtc, (NB, 1))                             # (NBV, TC)

    b2_eff = params['bt'] * s2 + b2
    row8 = lambda r: jnp.concatenate([r[None, :], jnp.zeros((7, TC), f32)], axis=0)
    b2_sec = row8(jnp.tile(b2_eff, T))                                       # rows [NBV, NBV+8)
    br_sec = row8(jnp.tile(br_fold, T))                                      # rows [NBV+8, NBV+16)
    bse_sec = row8(jnp.concatenate([params['bse'], jnp.zeros((TC - Cout,), f32)]))  # [NBV+16, +24)
    tile_sec = jnp.concatenate(                                              # rows [NBV+24, NBV+24+TC)
        [jnp.tile(jnp.eye(Cout, dtype=f32), (1, T)), jnp.zeros((TC - Cout, TC), f32)], axis=0)
    bias_pack = jnp.concatenate([b1_tab, b2_sec, br_sec, bse_sec, tile_sec], axis=0)

    # SE 1x1 conv weight padded to (TC, TC) so the whole SE path stays lane-aligned.
    Wse = params['Wse'][:, :, 0, 0].T
    Wse_pad = jnp.pad(Wse, ((0, TC - Cout), (0, TC - Cout)))

    # Per-sample pooling (1/V folded) and row-broadcast matrices.
    pool_mat = jnp.kron(jnp.eye(NB, dtype=f32), jnp.full((1, V), 1.0 / V, f32))   # (NB, NBV)
    expand_mat = jnp.kron(jnp.eye(NB, dtype=f32), jnp.ones((V, 1), f32))          # (NBV, NB)

    # Lane-friendly activation layout: (N_pad*V, T*Cin); pad N up to a multiple of NB.
    x_pad = jnp.pad(x_nctv, ((0, N_pad - N), (0, 0), (0, 0), (0, 0)))
    x2d = jnp.transpose(x_pad, (0, 3, 2, 1)).reshape(N_pad * V, TCin)

    kernel = functools.partial(_st_gcn_kernel, NBV=NBV, TC=TC, K=K)

    def const_spec(a):
        # Constant operands (index_map is constant -> fetched once by the pipeline).
        return pl.BlockSpec(a.shape, lambda n: (0,) * a.ndim)

    out2d = pl.pallas_call(
        kernel,
        out_shape=jax.ShapeDtypeStruct((N_pad * V, TC), jnp.float32),
        grid=(G,),
        in_specs=[
            pl.BlockSpec((NBV, TCin), lambda n: (n, 0)),
            const_spec(Abd), const_spec(Wbig), const_spec(Wtcn), const_spec(Wse_pad),
            const_spec(pool_mat), const_spec(expand_mat), const_spec(bias_pack),
        ],
        out_specs=pl.BlockSpec((NBV, TC), lambda n: (n, 0)),
        compiler_params=pltpu.CompilerParams(dimension_semantics=("parallel",)),
    )(x2d, Abd, Wbig, Wtcn, Wse_pad, pool_mat, expand_mat, bias_pack)

    out = jnp.transpose(out2d.reshape(N_pad, V, T, Cout), (0, 3, 2, 1))[:N]   # (N, Cout, T, V)
    return out, A


def torch_reference(x, A, p, eps=1e-5):
    """Independent pure-JAX reference in PyTorch NCHW layout."""
    def bn(z, g, b, m, v):
        return ((z - m[None, :, None, None]) / jnp.sqrt(v[None, :, None, None] + eps)
                * g[None, :, None, None] + b[None, :, None, None])

    # residual: Conv2d 1x1 + BN, then SqueezeAndExcitation
    r = jnp.einsum('nctv,oc->notv', x, p['Wr'][:, :, 0, 0]) + p['br'][None, :, None, None]
    r = bn(r, *p['bn_r'])
    s = jnp.mean(r, axis=(2, 3))
    e = jax.nn.sigmoid(jnp.einsum('nc,oc->no', s, p['Wse'][:, :, 0, 0]) + p['bse'][None, :])
    res = r * e[:, :, None, None]

    # ConvTemporalGraphical
    y = jnp.einsum('nctv,oc->notv', x, p['Wg'][:, :, 0, 0]) + p['bg'][None, :, None, None]
    N, KC, T, V = y.shape
    K = A.shape[0]
    y = y.reshape(N, K, KC // K, T, V)
    z = jnp.einsum('nkctv,kvw->nctw', y, A)

    # tcn: BN -> ReLU -> Conv2d (kt,1) -> BN
    h = jnp.maximum(bn(z, *p['bn1']), 0.0)
    kt = p['Wt'].shape[2]
    pad = (kt - 1) // 2
    hp = jnp.pad(h, ((0, 0), (0, 0), (pad, pad), (0, 0)))
    conv = sum(jnp.einsum('nctv,oc->notv', hp[:, :, i:i + T, :], p['Wt'][:, :, i, 0])
               for i in range(kt)) + p['bt'][None, :, None, None]
    tcn = bn(conv, *p['bn2'])
    return jnp.maximum(tcn + res, 0.0)


if __name__ == "__main__":
    # st_gcn(in_channels=4, out_channels=16, kernel_size=(3, 2), stride=1)
    # in != out  =>  residual branch is Conv2d(1x1) + BN.
    # N=16 so that the batched kernel runs with NB=8 (128-row blocks) over a 2-step grid.
    N, Cin, Cout, T, V = 16, 4, 16, 8, 16
    K, kt = 2, 3

    ks = jax.random.split(jax.random.PRNGKey(0), 22)
    nrm = lambda k, shape: 0.1 * jax.random.normal(k, shape, jnp.float32)
    uni = lambda k, shape: jax.random.uniform(k, shape, jnp.float32, 0.5, 1.5)

    params = {
        'Wg': nrm(ks[0], (K * Cout, Cin, 1, 1)),                # gcn.conv weight
        'bg': nrm(ks[1], (K * Cout,)),                          # gcn.conv bias
        'bn1': (uni(ks[2], (Cout,)), nrm(ks[3], (Cout,)),       # gamma, beta
                nrm(ks[4], (Cout,)), uni(ks[5], (Cout,))),      # running mean, var
        'Wt': nrm(ks[6], (Cout, Cout, kt, 1)),                  # temporal conv weight
        'bt': nrm(ks[7], (Cout,)),                              # temporal conv bias
        'bn2': (uni(ks[8], (Cout,)), nrm(ks[9], (Cout,)),
                nrm(ks[10], (Cout,)), uni(ks[11], (Cout,))),
        'Wr': nrm(ks[12], (Cout, Cin, 1, 1)),                   # residual conv weight
        'br': nrm(ks[13], (Cout,)),
        'bn_r': (uni(ks[14], (Cout,)), nrm(ks[15], (Cout,)),
                 nrm(ks[16], (Cout,)), uni(ks[17], (Cout,))),
        'Wse': nrm(ks[18], (Cout, Cout, 1, 1)),                 # SE 1x1 conv weight
        'bse': nrm(ks[19], (Cout,)),
    }

    x = jax.random.normal(ks[20], (N, Cin, T, V), jnp.float32)  # PyTorch NCHW = (N,C,T,V)
    A = 0.2 * jax.random.normal(ks[21], (K, V, V), jnp.float32)

    out, A_out = st_gcn_forward(x, A, params)
    out = jax.block_until_ready(out)

    ref = torch_reference(x, A, params)
    np.testing.assert_allclose(np.asarray(out), np.asarray(ref), rtol=2e-4, atol=2e-4)
    assert out.shape == (N, Cout, T, V) and A_out.shape == (K, V, V)
    print("KERNEL_OK")
</pallas_src>

<mosaic_0001>
module attributes {stable_mosaic.version = 11 : i64} {
  func.func @_st_gcn_kernel(%arg0: i32, %arg1: memref<128x32xf32, #tpu.memory_space<vmem>>, %arg2: memref<2x128x128xf32, #tpu.memory_space<vmem>>, %arg3: memref<32x512xf32, #tpu.memory_space<vmem>>, %arg4: memref<128x128xf32, #tpu.memory_space<vmem>>, %arg5: memref<128x128xf32, #tpu.memory_space<vmem>>, %arg6: memref<8x128xf32, #tpu.memory_space<vmem>>, %arg7: memref<128x8xf32, #tpu.memory_space<vmem>>, %arg8: memref<280x128xf32, #tpu.memory_space<vmem>>, %arg9: memref<128x128xf32, #tpu.memory_space<vmem>>) attributes {dimension_semantics = [#tpu.dimension_semantics<parallel>], iteration_bounds = array<i64: 2>, scalar_prefetch = 0 : i64, scratch_operands = 0 : i64, tpu.core_type = #tpu.core_type<tc>, window_params = [{transform_indices = @transform_0, window_bounds = array<i64: 128, 32>}, {pipeline_mode = #tpu.pipeline_mode<synchronous>, transform_indices = @transform_1, window_bounds = array<i64: 2, 128, 128>}, {pipeline_mode = #tpu.pipeline_mode<synchronous>, transform_indices = @transform_2, window_bounds = array<i64: 32, 512>}, {pipeline_mode = #tpu.pipeline_mode<synchronous>, transform_indices = @transform_3, window_bounds = array<i64: 128, 128>}, {pipeline_mode = #tpu.pipeline_mode<synchronous>, transform_indices = @transform_4, window_bounds = array<i64: 128, 128>}, {pipeline_mode = #tpu.pipeline_mode<synchronous>, transform_indices = @transform_5, window_bounds = array<i64: 8, 128>}, {pipeline_mode = #tpu.pipeline_mode<synchronous>, transform_indices = @transform_6, window_bounds = array<i64: 128, 8>}, {pipeline_mode = #tpu.pipeline_mode<synchronous>, transform_indices = @transform_7, window_bounds = array<i64: 280, 128>}, {transform_indices = @transform_8, window_bounds = array<i64: 128, 128>}]} {
    %c0 = arith.constant 0 : index
    %c0_0 = arith.constant 0 : index
    %0 = vector.load %arg1[%c0, %c0_0] : memref<128x32xf32, #tpu.memory_space<vmem>>, vector<128x32xf32>
    %c0_1 = arith.constant 0 : index
    %c0_2 = arith.constant 0 : index
    %1 = vector.load %arg3[%c0_1, %c0_2] : memref<32x512xf32, #tpu.memory_space<vmem>>, vector<32x512xf32>
    %cst = arith.constant dense<0.000000e+00> : vector<128x512xf32>
    %2 = tpu.matmul %0, %1, %cst {dimension_numbers = #tpu.dot_dimension_numbers<[1], [0], [0], [1], [0, 0, 1, 1], [], []>} : vector<128x32xf32>, vector<32x512xf32>, vector<128x512xf32> -> vector<128x512xf32>
    %c0_3 = arith.constant 0 : index
    %c0_4 = arith.constant 0 : index
    %c0_5 = arith.constant 0 : index
    %3 = vector.load %arg2[%c0_3, %c0_4, %c0_5] : memref<2x128x128xf32, #tpu.memory_space<vmem>>, vector<1x128x128xf32>
    %4 = vector.shape_cast %3 : vector<1x128x128xf32> to vector<128x128xf32>
    %5 = vector.extract_strided_slice %2 {offsets = [0, 0], sizes = [128, 128], strides = [1, 1]} : vector<128x512xf32> to vector<128x128xf32>
    %cst_6 = arith.constant dense<0.000000e+00> : vector<128x128xf32>
    %6 = tpu.matmul %4, %5, %cst_6 {dimension_numbers = #tpu.dot_dimension_numbers<[1], [0], [0], [1], [0, 0, 1, 1], [], []>} : vector<128x128xf32>, vector<128x128xf32>, vector<128x128xf32> -> vector<128x128xf32>
    %c1 = arith.constant 1 : index
    %c0_7 = arith.constant 0 : index
    %c0_8 = arith.constant 0 : index
    %7 = vector.load %arg2[%c1, %c0_7, %c0_8] : memref<2x128x128xf32, #tpu.memory_space<vmem>>, vector<1x128x128xf32>
    %8 = vector.shape_cast %7 : vector<1x128x128xf32> to vector<128x128xf32>
    %9 = vector.extract_strided_slice %2 {offsets = [0, 128], sizes = [128, 128], strides = [1, 1]} : vector<128x512xf32> to vector<128x128xf32>
    %cst_9 = arith.constant dense<0.000000e+00> : vector<128x128xf32>
    %10 = tpu.matmul %8, %9, %cst_9 {dimension_numbers = #tpu.dot_dimension_numbers<[1], [0], [0], [1], [0, 0, 1, 1], [], []>} : vector<128x128xf32>, vector<128x128xf32>, vector<128x128xf32> -> vector<128x128xf32>
    %11 = arith.addf %6, %10 : vector<128x128xf32>
    %c0_10 = arith.constant 0 : index
    %c0_11 = arith.constant 0 : index
    %12 = vector.load %arg8[%c0_10, %c0_11] : memref<280x128xf32, #tpu.memory_space<vmem>>, vector<128x128xf32>
    %13 = arith.addf %11, %12 : vector<128x128xf32>
    %cst_12 = arith.constant 0.000000e+00 : f32
    %14 = vector.broadcast %cst_12 : f32 to vector<128x128xf32>
    %15 = arith.maximumf %13, %14 : vector<128x128xf32>
    %c0_13 = arith.constant 0 : index
    %c0_14 = arith.constant 0 : index
    %16 = vector.load %arg4[%c0_13, %c0_14] : memref<128x128xf32, #tpu.memory_space<vmem>>, vector<128x128xf32>
    %cst_15 = arith.constant dense<0.000000e+00> : vector<128x128xf32>
    %17 = tpu.matmul %15, %16, %cst_15 {dimension_numbers = #tpu.dot_dimension_numbers<[1], [0], [0], [1], [0, 0, 1, 1], [], []>} : vector<128x128xf32>, vector<128x128xf32>, vector<128x128xf32> -> vector<128x128xf32>
    %c128 = arith.constant 128 : index
    %c0_16 = arith.constant 0 : index
    %18 = vector.load %arg8[%c128, %c0_16] : memref<280x128xf32, #tpu.memory_space<vmem>>, vector<1x128xf32>
    %19 = vector.broadcast %18 : vector<1x128xf32> to vector<128x128xf32>
    %20 = arith.addf %17, %19 : vector<128x128xf32>
    %21 = vector.extract_strided_slice %2 {offsets = [0, 256], sizes = [128, 128], strides = [1, 1]} : vector<128x512xf32> to vector<128x128xf32>
    %c136 = arith.constant 136 : index
    %c0_17 = arith.constant 0 : index
    %22 = vector.load %arg8[%c136, %c0_17] : memref<280x128xf32, #tpu.memory_space<vmem>>, vector<1x128xf32>
    %23 = vector.broadcast %22 : vector<1x128xf32> to vector<128x128xf32>
    %24 = arith.addf %21, %23 : vector<128x128xf32>
    %c0_18 = arith.constant 0 : index
    %c0_19 = arith.constant 0 : index
    %25 = vector.load %arg6[%c0_18, %c0_19] : memref<8x128xf32, #tpu.memory_space<vmem>>, vector<8x128xf32>
    %26 = vector.extract_strided_slice %2 {offsets = [0, 384], sizes = [128, 128], strides = [1, 1]} : vector<128x512xf32> to vector<128x128xf32>
    %cst_20 = arith.constant dense<0.000000e+00> : vector<8x128xf32>
    %27 = tpu.matmul %25, %26, %cst_20 {dimension_numbers = #tpu.dot_dimension_numbers<[1], [0], [0], [1], [0, 0, 1, 1], [], []>} : vector<8x128xf32>, vector<128x128xf32>, vector<8x128xf32> -> vector<8x128xf32>
    %c136_21 = arith.constant 136 : index
    %c0_22 = arith.constant 0 : index
    %28 = vector.load %arg8[%c136_21, %c0_22] : memref<280x128xf32, #tpu.memory_space<vmem>>, vector<1x128xf32>
    %29 = vector.broadcast %28 : vector<1x128xf32> to vector<8x128xf32>
    %30 = arith.addf %27, %29 : vector<8x128xf32>
    %c0_23 = arith.constant 0 : index
    %c0_24 = arith.constant 0 : index
    %31 = vector.load %arg5[%c0_23, %c0_24] : memref<128x128xf32, #tpu.memory_space<vmem>>, vector<128x128xf32>
    %cst_25 = arith.constant dense<0.000000e+00> : vector<8x128xf32>
    %32 = tpu.matmul %30, %31, %cst_25 {dimension_numbers = #tpu.dot_dimension_numbers<[1], [0], [0], [1], [0, 0, 1, 1], [], []>} : vector<8x128xf32>, vector<128x128xf32>, vector<8x128xf32> -> vector<8x128xf32>
    %c144 = arith.constant 144 : index
    %c0_26 = arith.constant 0 : index
    %33 = vector.load %arg8[%c144, %c0_26] : memref<280x128xf32, #tpu.memory_space<vmem>>, vector<1x128xf32>
    %34 = vector.broadcast %33 : vector<1x128xf32> to vector<8x128xf32>
    %35 = arith.addf %32, %34 : vector<8x128xf32>
    %36 = arith.negf %35 : vector<8x128xf32>
    %37 = math.exp %36 : vector<8x128xf32>
    %cst_27 = arith.constant 1.000000e+00 : f32
    %38 = vector.broadcast %cst_27 : f32 to vector<8x128xf32>
    %39 = arith.addf %38, %37 : vector<8x128xf32>
    %40 = arith.divf %38, %39 : vector<8x128xf32>
    %c152 = arith.constant 152 : index
    %c0_28 = arith.constant 0 : index
    %41 = vector.load %arg8[%c152, %c0_28] : memref<280x128xf32, #tpu.memory_space<vmem>>, vector<128x128xf32>
    %cst_29 = arith.constant dense<0.000000e+00> : vector<8x128xf32>
    %42 = tpu.matmul %40, %41, %cst_29 {dimension_numbers = #tpu.dot_dimension_numbers<[1], [0], [0], [1], [0, 0, 1, 1], [], []>} : vector<8x128xf32>, vector<128x128xf32>, vector<8x128xf32> -> vector<8x128xf32>
    %c0_30 = arith.constant 0 : index
    %c0_31 = arith.constant 0 : index
    %43 = vector.load %arg7[%c0_30, %c0_31] : memref<128x8xf32, #tpu.memory_space<vmem>>, vector<128x8xf32>
    %cst_32 = arith.constant dense<0.000000e+00> : vector<128x128xf32>
    %44 = tpu.matmul %43, %42, %cst_32 {dimension_numbers = #tpu.dot_dimension_numbers<[1], [0], [0], [1], [0, 0, 1, 1], [], []>} : vector<128x8xf32>, vector<8x128xf32>, vector<128x128xf32> -> vector<128x128xf32>
    %45 = arith.mulf %24, %44 : vector<128x128xf32>
    %46 = arith.addf %20, %45 : vector<128x128xf32>
    %cst_33 = arith.constant 0.000000e+00 : f32
    %47 = vector.broadcast %cst_33 : f32 to vector<128x128xf32>
    %48 = arith.maximumf %46, %47 : vector<128x128xf32>
    %c0_34 = arith.constant 0 : index
    %c0_35 = arith.constant 0 : index
    %49 = vector.load %arg9[%c0_34, %c0_35] : memref<128x128xf32, #tpu.memory_space<vmem>>, vector<128x128xf32>
    tpu.vector_store %arg9[%c0_34, %c0_35], %48 {strides = array<i32>} : memref<128x128xf32, #tpu.memory_space<vmem>>, vector<128x128xf32>,
    return
  }
  func.func @transform_0(%arg0: i32) -> (i32, i32) {
    %c0_i32 = arith.constant 0 : i32
    %c0_i32_0 = arith.constant 0 : i32
    return %arg0, %c0_i32 : i32, i32
  }
  func.func @transform_1(%arg0: i32) -> (i32, i32, i32) {
    %c0_i32 = arith.constant 0 : i32
    %c0_i32_0 = arith.constant 0 : i32
    %c0_i32_1 = arith.constant 0 : i32
    %c0_i32_2 = arith.constant 0 : i32
    return %c0_i32, %c0_i32_0, %c0_i32_1 : i32, i32, i32
  }
  func.func @transform_2(%arg0: i32) -> (i32, i32) {
    %c0_i32 = arith.constant 0 : i32
    %c0_i32_0 = arith.constant 0 : i32
    %c0_i32_1 = arith.constant 0 : i32
    return %c0_i32, %c0_i32_0 : i32, i32
  }
  func.func @transform_3(%arg0: i32) -> (i32, i32) {
    %c0_i32 = arith.constant 0 : i32
    %c0_i32_0 = arith.constant 0 : i32
    %c0_i32_1 = arith.constant 0 : i32
    return %c0_i32, %c0_i32_0 : i32, i32
  }
  func.func @transform_4(%arg0: i32) -> (i32, i32) {
    %c0_i32 = arith.constant 0 : i32
    %c0_i32_0 = arith.constant 0 : i32
    %c0_i32_1 = arith.constant 0 : i32
    return %c0_i32, %c0_i32_0 : i32, i32
  }
  func.func @transform_5(%arg0: i32) -> (i32, i32) {
    %c0_i32 = arith.constant 0 : i32
    %c0_i32_0 = arith.constant 0 : i32
    %c0_i32_1 = arith.constant 0 : i32
    return %c0_i32, %c0_i32_0 : i32, i32
  }
  func.func @transform_6(%arg0: i32) -> (i32, i32) {
    %c0_i32 = arith.constant 0 : i32
    %c0_i32_0 = arith.constant 0 : i32
    %c0_i32_1 = arith.constant 0 : i32
    return %c0_i32, %c0_i32_0 : i32, i32
  }
  func.func @transform_7(%arg0: i32) -> (i32, i32) {
    %c0_i32 = arith.constant 0 : i32
    %c0_i32_0 = arith.constant 0 : i32
    %c0_i32_1 = arith.constant 0 : i32
    return %c0_i32, %c0_i32_0 : i32, i32
  }
  func.func @transform_8(%arg0: i32) -> (i32, i32) {
    %c0_i32 = arith.constant 0 : i32
    %c0_i32_0 = arith.constant 0 : i32
    return %arg0, %c0_i32 : i32, i32
  }
}

</mosaic_0001>

<bundles_post_ra>
// kernel: tpu_custom_call.1
= control target key start
LH: loop header
LB: loop body
LE: loop exit
PB: predicated region body
PF: predicated region fallthrough
CT: control target
= control target key end

     0   :  { %13 = vsyncpa [#allocation3], 0  ;;  %s3793_s0 = inlined_call_operand.vmem [shape: f32[256,32], index: 0, kind: input, shape index: {}]   ;;  %s3794_s1 = inlined_call_operand.hbm [shape: f32[2,128,128], index: 1, kind: input, shape index: {}]   ;;  %s3795_s2 = inlined_call_operand.vmem [shape: f32[32,512], index: 2, kind: input, shape index: {}]   ;;  %s3796_s3 = inlined_call_operand.hbm [shape: f32[128,128], index: 3, kind: input, shape index: {}]   ;;  %s3797_s4 = inlined_call_operand.hbm [shape: f32[128,128], index: 4, kind: input, shape index: {}]   ;;  %s3798_s5 = inlined_call_operand.vmem [shape: f32[8,128], index: 5, kind: input, shape index: {}]   ;;  %s3799_s6 = inlined_call_operand.vmem [shape: f32[128,8], index: 6, kind: input, shape index: {}]   ;;  %s3800_s7 = inlined_call_operand.vmem [shape: f32[280,128], index: 7, kind: input, shape index: {}]   ;;  %s3801_s8 = inlined_call_operand.hbm [shape: f32[256,128], index: 8, kind: output, shape index: {}]  }
   0x1   :  { %14 = vsyncpa [#allocation6], 0 }
   0x2   :  { %15 = vsyncpa [#allocation4], 0 }
   0x3   :  { %17 = vsyncpa [#allocation4 + $0x1], 0  ;;  %s2978_s27 = smov 0   ;;  %s2980_s28 = smov 0  }
   0x4   :  { %s2982_s29 = smov 0   ;;  %s2984_s30 = smov 0  }
   0x5 LB: > { %3809 = sst [smem:[#allocation12_spill]] %s2916_s29  ;;  %s2999_s9 = sadd.s32 4294967295, %s2920_s30   ;;  %s2920_s30 = sphi %s2984_s30, %s3826_s30   ;;  %s2916_s29 = sphi %s2982_s29, %s3828_s29   ;;  %s2912_s28 = sphi %s2980_s28, %s3830_s28   ;;  %s2908_s27 = sphi %s2978_s27, %s3829_s27  }
   0x6   : > { %s1947_s10 = sadd.s32 4294967294, %s2920_s30   ;;  %s3003_s11 = sadd.s32 1, %s2920_s30  }
   0x7   : > { %3810 = sst [smem:[#allocation13_spill]] %s3003_s11  ;;  %s203_s12 = sadd.s32 1, %s2916_s29 }
   0x8   : > { %s200_s13 = ssub.s32 %s2920_s30, %s3003_s11  ;;  %p213_p0 = scmp.ne.s32.totalorder %s2916_s29, %s2912_s28 }
   0x9   : > { %p201_p1 = scmp.eq.s32.totalorder %s200_s13, 0  ;;  %p214_p2 = scmp.eq.s32.totalorder %s2999_s9, 1 }
   0xa   : > { %p219_p3 = scmp.ne.s32.totalorder %s2912_s28, %s2908_s27  ;;  %p220_p4 = scmp.eq.s32.totalorder %s1947_s10, 1 }
   0xb   : > { %s3014_s14 = scalar_select %p201_p1, %s2916_s29, %s203_s12  }
   0xc   : > { %p3016_p5 = por %p214_p2, %p213_p0  ;;  %p3020_p6 = por %p220_p4, %p219_p3 }
   0xd   : > { %3811 = sst [smem:[#allocation14_spill]] %s3014_s14  ;;  %p1948_p7 = scmp.ge.s32.totalorder %s2920_s30, 1 }
   0xe   : > { %s3812_s15 = scalar_select %p3016_p5, 1, 0 }
   0xf   : > { %s3813_s16 = scalar_select %p3020_p6, 1, 0 }
  0x10   : > { %p227_p8 = scmp.lt.s32.totalorder %s2920_s30, 3  ;;  %p3802_p9 = scmp.eq.s32.totalorder %s2999_s9, 0 }
  0x11   : > { %3814 = sst [smem:[#allocation15_spill]] %s3813_s16  ;;  %s2922_s18 = smov [#allocation5]  }
  0x12   : > { %p3027_p10 = pnand %p1948_p7, %p227_p8  ;;  %s255_s19 = sshll.u32 %s2922_s18, 4  ;;  %s3033_s19 = int_to_ptr.vmem [resolvable:$true] %s255_s19 }
  0x13   : > { %s2923_s21 = smov [#allocation2]   ;;  %s2924_s23 = smov [#allocation7]  }
  0x14   : > { %s3815_s17 = scalar_select %p3027_p10, 1, 0 }
  0x15   : > { %p2699_p11 = pneg %p3027_p10  ;;  %s239_s22 = sshll.u32 %s2923_s21, 4  ;;  %s3041_s22 = int_to_ptr.vmem [resolvable:$true] %s239_s22 }
  0x16   : > { %s3043_s24 = sshll.u32 %s2924_s23, 4  ;;  %s2766_s10 = scalar_lea.hbm %s3796_s3, 2048  ;;  %s269_s24 = int_to_ptr.vmem [resolvable:$true] %s3043_s24 }
  0x17   : > { %p3037_p12 = pnand %p3802_p9, %p2699_p11  ;;  %p2767_p13 = scmp.ne.s32.totalorder %s3796_s3, %s2766_s10 }
  0x18   : > { %p2773_p3 = scmp.lt.u32.totalorder %s2766_s10, %s3796_s3 }
  0x19   : > { %p3053_p0 = pneg %p3037_p12 }
  0x1b   : > { %p2769_p1 = pnand %p3053_p0, %p2767_p13 }
  0x1d   : > { %p2770_p2 = pneg %p2769_p1 }
  0x1f   : > { %p2775_p4 = pnand %p2773_p3, %p2770_p2 }
  0x21   : > { %2778 = shalt.err (!%p2775_p4)
}
  0x22   : > { %s2779_s25 = scalar_lea.vmem %s3033_s19, 2048  ;;  %p2787_p9 = scmp.lt.s32.totalorder %s3033_s19, %s3033_s19 }
  0x23   : > { %p2780_p7 = scmp.ne.s32.totalorder %s3033_s19, %s2779_s25  ;;  %p2788_p6 = scmp.lt.s32.totalorder %s2779_s25, %s2779_s25 }
  0x25   : > { %p2782_p8 = pnand %p2780_p7, %p3053_p0  ;;  %p2789_p13 = por %p2788_p6, %p2787_p9 }
  0x27   : > { %p2783_p11 = pneg %p2782_p8 }
  0x29   : > { %p2790_p1 = pnand %p2789_p13, %p2783_p11 }
  0x2b   : > { %2793 = shalt.err (!%p2790_p1)
}
  0x2c   : > { %s2925_s26 = smov 128   ;;  %s2926_s10 = smov 8  }
  0x2d   : > { %2705 = dma.hbm_to_vmem [thread:$0]  (!%p3037_p12), %s3796_s3, 2048, %s3033_s19, [#allocation6], %s2925_s26, %s2925_s26, %s2926_s10  }
  0x2e   : > { %s2794_s25 = scalar_lea.hbm %s3794_s1, 4096 }
  0x2f   : > { %p2795_p6 = scmp.ne.s32.totalorder %s3794_s1, %s2794_s25  ;;  %p2801_p3 = scmp.lt.u32.totalorder %s2794_s25, %s3794_s1 }
  0x31   : > { %p2797_p9 = pnand %p2795_p6, %p3053_p0 }
  0x33   : > { %p2798_p2 = pneg %p2797_p9 }
  0x35   : > { %p2803_p4 = pnand %p2801_p3, %p2798_p2 }
  0x37   : > { %2806 = shalt.err (!%p2803_p4)
}
  0x38   : > { %s2807_s19 = scalar_lea.vmem %s3041_s22, 4096  ;;  %p2815_p13 = scmp.lt.s32.totalorder %s3041_s22, %s3041_s22 }
  0x39   : > { %p2808_p7 = scmp.ne.s32.totalorder %s3041_s22, %s2807_s19  ;;  %p2816_p1 = scmp.lt.s32.totalorder %s2807_s19, %s2807_s19 }
  0x3b   : > { %p2810_p8 = pnand %p2808_p7, %p3053_p0  ;;  %p2817_p6 = por %p2816_p1, %p2815_p13 }
  0x3d   : > { %p2811_p11 = pneg %p2810_p8 }
  0x3f   : > { %p2818_p9 = pnand %p2817_p6, %p2811_p11 }
  0x41   : > { %2821 = shalt.err (!%p2818_p9)
}
  0x42   : > { %2702 = dma.hbm_to_vmem [thread:$0]  (!%p3037_p12), %s3794_s1, 4096, %s3041_s22, [#allocation3], %s2925_s26, %s2925_s26, %s2926_s10  }
  0x43   : > { %s2822_s12 = scalar_lea.hbm %s3797_s4, 2048 }
  0x44   : > { %p2823_p2 = scmp.ne.s32.totalorder %s3797_s4, %s2822_s12  ;;  %p2829_p7 = scmp.lt.u32.totalorder %s2822_s12, %s3797_s4 }
  0x46   : > { %p2825_p3 = pnand %p2823_p2, %p3053_p0 }
  0x48   : > { %p2826_p4 = pneg %p2825_p3 }
  0x4a   : > { %p2831_p8 = pnand %p2829_p7, %p2826_p4 }
  0x4c   : > { %2834 = shalt.err (!%p2831_p8)
}
  0x4d   : > { %s2835_s19 = scalar_lea.vmem %s269_s24, 2048  ;;  %p2843_p6 = scmp.lt.s32.totalorder %s269_s24, %s269_s24 }
  0x4e   : > { %p2836_p11 = scmp.ne.s32.totalorder %s269_s24, %s2835_s19  ;;  %p2844_p9 = scmp.lt.s32.totalorder %s2835_s19, %s2835_s19 }
  0x50   : > { %p2838_p13 = pnand %p2836_p11, %p3053_p0  ;;  %p2845_p5 = por %p2844_p9, %p2843_p6 }
  0x52   : > { %p2839_p1 = pneg %p2838_p13 }
  0x54   : > { %p2846_p10 = pnand %p2845_p5, %p2839_p1 }
  0x56   : > { %2849 = shalt.err (!%p2846_p10)
}
  0x57   : > { %2708 = dma.hbm_to_vmem [thread:$0]  (!%p3037_p12), %s3797_s4, 2048, %s269_s24, [#allocation6], %s2925_s26, %s2925_s26, %s2926_s10  }
  0x58   : > { %p3818_p2 = scmp.ne.s32.totalorder %s3815_s17, 0 }
  0x59   : > { %p3819_p0 = scmp.eq.s32.totalorder (!%p3818_p2), %s2999_s9, 0 }
  0x5a   : > { %302 = sbr.rel (%p3818_p2) target bundleno = 1596 (0x63c), region = 52 }
  0x61   : > { %2895 = dma.done.wait (%p3819_p0), [#allocation3], 4096   ;;  %p3820_p3 = pmov %p3819_p0 }
  0x62   : > { %p3821_p5 = pmov %p3819_p0 }
  0x63   : > { %2897 = vsyncadd (%p3820_p3), [#allocation3], 4294963200 }
  0x64   : > { %2899 = dma.done.wait (%p3821_p5), [#allocation6], 4096   ;;  %p3822_p10 = pmov %p3819_p0 }
  0x65   : > { %s1958_s20 = sshll.u32 %s2999_s9, 4  ;;  %v2927_v0 = vmov 0.0   ;;  %v368_v1 = vld [vmem:[%s3795_s2 + $0x8] sm:$0xff]  ;;  %v367_v3 = vld [vmem:[%s3795_s2] sm:$0xff]  ;;  %vm383_vm0 = vcmask 261120   ;;  %v370_v29 = vld [vmem:[%s3795_s2 + $0x18] sm:$0xff] }
  0x66   : > { %2901 = vsyncadd (%p3822_p10), [#allocation6], 4294963200  ;;  %496 = vmatprep.mubr.f32.mxu0 %v2927_v0  ;;  %p345_p12 = scmp.lt.s32.totalorder %s1958_s20, 31  ;;  %568 = vmatprep.mubr.f32.mxu1 %v2927_v0  ;;  %v372_v2 = vld [vmem:[%s3795_s2 + $0x28] sm:$0xff]  ;;  %v371_v5 = vld [vmem:[%s3795_s2 + $0x20] sm:$0xff]  ;;  %vm2929_vm1 = vmmov 0  }
  0x67   : > { %v2481_v4 = vpack.c.bf16 %v372_v2, %v368_v1  ;;  %v376_v6 = vld [vmem:[%s3795_s2 + $0x48] sm:$0xff]  ;;  %v2483_v8 = vpack.c.bf16 %v371_v5, %v367_v3  ;;  %v375_v10 = vld [vmem:[%s3795_s2 + $0x40] sm:$0xff]  ;;  %v374_v30 = vld [vmem:[%s3795_s2 + $0x38] sm:$0xff]  ;;  %vm1582_vm2 = vcmask 64512   ;;  %s341_s10 = sand.u32 1, %s2912_s28   ;;  %s2017_s16 = sshll.u32 %s2999_s9, 11 }
  0x68   : > { %s3832_s20 = smov (!%p345_p12, %s1958_s20), 31  ;;  %v380_v7 = vld [vmem:[%s3795_s2 + $0x68] sm:$0xff]  ;;  %v379_v11 = vld [vmem:[%s3795_s2 + $0x60] sm:$0xff]  ;;  %v2489_v31 = vpack.c.bf16 %v374_v30, %v370_v29  ;;  %v369_v32 = vld [vmem:[%s3795_s2 + $0x10] sm:$0xff]  ;;  %s1957_s11 = sshll.u32 %s341_s10, 7 }
  0x69   : > { %v2485_v9 = vpack.c.bf16 %v380_v7, %v376_v6  ;;  %s1959_s17 = sshll.u32 %s3832_s20, 3  ;;  %2482 = vmatprep.subr.bf16.mxu0 %v2481_v4  ;;  %2665 = vmatprep.subr.bf16.mxu1 %v2481_v4  ;;  %v2487_v12 = vpack.c.bf16 %v379_v11, %v375_v10  ;;  %v373_v33 = vld [vmem:[%s3795_s2 + $0x30] sm:$0xff]  ;;  %v378_v35 = vld [vmem:[%s3795_s2 + $0x58] sm:$0xff]  ;;  %v771_v41 = vld [vmem:[#allocation2 + $0x80] sm:$0xff]  ;;  %s3677_s14 = scalar_lea.vmem [#allocation8], %s1957_s11 }
  0x6a   : > { %2484 = vmatpush1.bf16.msra.mxu0 %v2483_v8  ;;  %2667 = vmatpush1.bf16.msra.mxu1 %v2483_v8  ;;  %s3165_s26 = scalar_lea.vmem %s3793_s0, %s1959_s17  ;;  %v2491_v34 = vpack.c.bf16 %v373_v33, %v369_v32  ;;  %v382_v36 = vld [vmem:[%s3795_s2 + $0x78] sm:$0xff]  ;;  %v377_v38 = vld [vmem:[%s3795_s2 + $0x50] sm:$0xff]  ;;  %v1125_v42 = vld [vmem:[#allocation5] sm:$0xff]  ;;  %s1854_s12 = sshll.u32 %s3677_s14, 4  ;;  %s3746_s12 = int_to_ptr.vmem [resolvable:$true] %s1854_s12 }
  0x6b   : > { %2486 = vmatprep.subr.bf16.mxu0 %v2485_v9  ;;  %2666 = vmatprep.subr.bf16.mxu1 %v2485_v9  ;;  %v3168_v13 = vld [vmem:[%s3165_s26] sm:$0xff]  ;;  %v352_v15 = vld [vmem:[%s3165_s26 + $0x8] sm:$0xff]  ;;  %v353_v17 = vld [vmem:[%s3165_s26 + $0x10] sm:$0xff]  ;;  %v2493_v37 = vpack.c.bf16 %v382_v36, %v378_v35  ;;  %s3744_s23 = scalar_lea.hbm %s3801_s8, %s2017_s16  ;;  %s3752_s9 = scalar_lea.sflag [#allocation4], %s341_s10 }
  0x6c   : > { %v3171_v14 = vld [vmem:[%s3165_s26 + $0x60] sm:$0xff]  ;;  %v3181_v16 = vld [vmem:[%s3165_s26 + $0x68] sm:$0xff]  ;;  %v3190_v18 = vld [vmem:[%s3165_s26 + $0x70] sm:$0xff]  ;;  %s2850_s25 = scalar_lea.vmem %s3746_s12, 2048  ;;  %p3823_p7 = scmp.ne.s32.totalorder %s3812_s15, 0 }
  0x6d   : > { %v354_v19 = vld [vmem:[%s3165_s26 + $0x18] sm:$0xff]  ;;  %v355_v21 = vld [vmem:[%s3165_s26 + $0x20] sm:$0xff]  ;;  %v356_v22 = vld [vmem:[%s3165_s26 + $0x28] sm:$0xff]  ;;  %p2851_p4 = scmp.ne.s32.totalorder %s3746_s12, %s2850_s25  ;;  %s2930_s19 = smov [#allocation8]  }
  0x6e   : > { %2488 = vmatpush1.bf16.msra.mxu0 %v2487_v12  ;;  %2668 = vmatpush1.bf16.msra.mxu1 %v2487_v12  ;;  %v3199_v20 = vld [vmem:[%s3165_s26 + $0x78] sm:$0xff]  ;;  %v357_v23 = vld [vmem:[%s3165_s26 + $0x30] sm:$0xff]  ;;  %v359_v25 = vld [vmem:[%s3165_s26 + $0x40] sm:$0xff]  ;;  %s2854_s22 = sshll.u32 %s2930_s19, 4  ;;  %s2855_s22 = int_to_ptr.vmem [resolvable:$false] %s2854_s22 }
  0x6f   : > { %v358_v24 = vld [vmem:[%s3165_s26 + $0x38] sm:$0xff]  ;;  %v360_v26 = vld [vmem:[%s3165_s26 + $0x48] sm:$0xff]  ;;  %v361_v27 = vld [vmem:[%s3165_s26 + $0x50] sm:$0xff]  ;;  %2490 = vmatprep.subr.bf16.mxu1 %v2489_v31  ;;  %p2852_p8 = pnand %p2851_p4, %p3823_p7  ;;  %s2856_s29 = scalar_lea.vmem %s2855_s22, 4096 }
  0x70   : > { %v362_v28 = vld [vmem:[%s3165_s26 + $0x58] sm:$0xff]  ;;  %v381_v39 = vld [vmem:[%s3795_s2 + $0x70] sm:$0xff]  ;;  %v1126_v43 = vld [vmem:[#allocation5 + $0x8] sm:$0xff]  ;;  %p2857_p13 = scmp.lt.s32.totalorder %s3746_s12, %s2855_s22  ;;  %p2858_p1 = scmp.lt.s32.totalorder %s2856_s29, %s2850_s25 }
  0x71   : > { %1960 = vmatmul.mubr.msk.f32.vlgmr.msra.gmra.mrb[0].mxu0 %vm383_vm0, %v3168_v13  ;;  %1972 = vmatmul.mubr.msk.f32.vlgmr.msra.gmra.mrb[0].mxu1 %vm383_vm0, %v3171_v14  ;;  %v2495_v40 = vpack.c.bf16 %v381_v39, %v377_v38  ;;  %v1127_v44 = vld [vmem:[#allocation5 + $0x10] sm:$0xff]  ;;  %v2561_v45 = vpack.c.bf16 %v1126_v43, %v1125_v42  ;;  %v1128_v46 = vld [vmem:[#allocation5 + $0x18] sm:$0xff]  ;;  %v1129_v48 = vld [vmem:[#allocation5 + $0x20] sm:$0xff]  ;;  %p2853_p11 = pneg %p2852_p8 }
  0x72   : > { %502 = vmatprep.mubr.f32.mxu0 %v2927_v0  ;;  %574 = vmatprep.mubr.f32.mxu1 %v2927_v0  ;;  %v2565_v47 = vpack.c.bf16 %v1128_v46, %v1127_v44  ;;  %v1130_v49 = vld [vmem:[#allocation5 + $0x28] sm:$0xff]  ;;  %v1131_v12 = vld [vmem:[#allocation5 + $0x30] sm:$0xff]  ;;  %v1136_v31 = vld [vmem:[#allocation5 + $0x58] sm:$0xff]  ;;  %p2859_p6 = por %p2858_p1, %p2857_p13 }
  0x73   : > { %2492 = vmatpush1.bf16.msra.mxu1 %v2491_v34  ;;  %v2569_v50 = vpack.c.bf16 %v1130_v49, %v1129_v48  ;;  %v1135_v30 = vld [vmem:[#allocation5 + $0x50] sm:$0xff]  ;;  %v1137_v39 = vld [vmem:[#allocation5 + $0x60] sm:$0xff]  ;;  %v772_v48 = vld [vmem:[#allocation2 + $0x88] sm:$0xff] }
  0x74   : > { %2494 = vmatprep.subr.bf16.mxu1 %v2493_v37  ;;  %v2581_v33 = vpack.c.bf16 %v1136_v31, %v1135_v30  ;;  %v773_v49 = vld [vmem:[#allocation2 + $0x90] sm:$0xff]  ;;  %p2860_p9 = pnand %p2859_p6, %p2853_p11 }
  0x75   : > { %1961 = vmatmul.mubr.msk.f32.gmra.mrb[2].mxu0 %vm383_vm0, %v352_v15  ;;  %1973 = vmatmul.mubr.msk.f32.gmra.mrb[2].mxu1 %vm383_vm0, %v3181_v16 }
  0x76   : > { %508 = vmatprep.mubr.f32.mxu0 %v2927_v0  ;;  %580 = vmatprep.mubr.f32.mxu1 %v2927_v0 }
  0x77   : > { %2496 = vmatpush1.bf16.msra.mxu1 %v2495_v40  ;;  %v1138_v40 = vld [vmem:[#allocation5 + $0x68] sm:$0xff] }
  0x78   : > { %2562 = vmatprep.subr.bf16.mxu1 %v2561_v45  ;;  %v2585_v42 = vpack.c.bf16 %v1138_v40, %v1137_v39 }
  0x79   : > { %1962 = vmatmul.mubr.msk.f32.gmra.mrb[4].mxu0 %vm383_vm0, %v353_v17  ;;  %1974 = vmatmul.mubr.msk.f32.gmra.mrb[4].mxu1 %vm383_vm0, %v3190_v18 }
  0x7a   : > { %514 = vmatprep.mubr.f32.mxu0 %v2927_v0  ;;  %586 = vmatprep.mubr.f32.mxu1 %v2927_v0 }
  0x7d   : > { %1963 = vmatmul.mubr.msk.f32.gmra.mrb[6].mxu0 %vm383_vm0, %v354_v19  ;;  %1975 = vmatmul.mubr.msk.f32.gmra.mrb[6].mxu1 %vm383_vm0, %v3199_v20 }
  0x7e   : > { %520 = vmatprep.mubr.f32.mxu0 %v2927_v0  ;;  %657 = vmatprep.mubr.f32.mxu1 %v2927_v0 }
  0x81   : > { %1964 = vmatmul.mubr.msk.f32.gmra.mrb[8].mxu0 %vm383_vm0, %v355_v21  ;;  %1976 = vmatmul.mubr.msk.f32.vlgmr.msra.gmra.mrb[8].mxu1 %vm383_vm0, %v3168_v13  ;;  %v1132_v13 = vld [vmem:[#allocation5 + $0x38] sm:$0xff] }
  0x82   : > { %526 = vmatprep.mubr.f32.mxu0 %v2927_v0  ;;  %663 = vmatprep.mubr.f32.mxu1 %v2927_v0 }
  0x83   : > { %2564 = vmatpush3.bf16.msra.mxu1 %v2561_v45 }
  0x84   : > { %2566 = vmatprep.subr.bf16.mxu1 %v2565_v47 }
  0x85   : > { %1965 = vmatmul.mubr.msk.f32.gmra.mrb[10].mxu0 %vm383_vm0, %v356_v22  ;;  %1977 = vmatmul.mubr.msk.f32.gmra.mrb[10].mxu1 %vm383_vm0, %v352_v15  ;;  %v2573_v15 = vpack.c.bf16 %v1132_v13, %v1131_v12  ;;  %v766_v12 = vld [vmem:[#allocation2 + $0x60] sm:$0xff]  ;;  %v767_v13 = vld [vmem:[#allocation2 + $0x68] sm:$0xff] }
  0x86   : > { %532 = vmatprep.mubr.f32.mxu0 %v2927_v0  ;;  %669 = vmatprep.mubr.f32.mxu1 %v2927_v0 }
  0x87   : > { %2568 = vmatpush3.bf16.msra.mxu1 %v2565_v47 }
  0x88   : > { %2570 = vmatprep.subr.bf16.mxu1 %v2569_v50 }
  0x89   : > { %1966 = vmatmul.mubr.msk.f32.gmra.mrb[12].mxu0 %vm383_vm0, %v357_v23  ;;  %1978 = vmatmul.mubr.msk.f32.gmra.mrb[12].mxu1 %vm383_vm0, %v353_v17 }
  0x8a   : > { %538 = vmatprep.mubr.f32.mxu0 %v2927_v0  ;;  %675 = vmatprep.mubr.f32.mxu1 %v2927_v0 }
  0x8b   : > { %2572 = vmatpush3.bf16.msra.mxu1 %v2569_v50  ;;  %v774_v50 = vld [vmem:[#allocation2 + $0x98] sm:$0xff] }
  0x8c   : > { %2574 = vmatprep.subr.bf16.mxu1 %v2573_v15 }
  0x8d   : > { %1967 = vmatmul.mubr.msk.f32.gmra.mrb[14].mxu0 %vm383_vm0, %v358_v24  ;;  %1979 = vmatmul.mubr.msk.f32.gmra.mrb[14].mxu1 %vm383_vm0, %v354_v19 }
  0x8e   : > { %544 = vmatprep.mubr.f32.mxu0 %v2927_v0  ;;  %681 = vmatprep.mubr.f32.mxu1 %v2927_v0 }
  0x8f   : > { %2576 = vmatpush3.bf16.msra.mxu1 %v2573_v15  ;;  %v769_v15 = vld [vmem:[#allocation2 + $0x78] sm:$0xff] }
  0x91   : > { %1968 = vmatmul.mubr.msk.f32.gmra.mrb[16].mxu0 %vm383_vm0, %v359_v25  ;;  %1980 = vmatmul.mubr.msk.f32.gmra.mrb[16].mxu1 %vm383_vm0, %v355_v21  ;;  %v1133_v21 = vld [vmem:[#allocation5 + $0x40] sm:$0xff] }
  0x92   : > { %550 = vmatprep.mubr.f32.mxu0 %v2927_v0  ;;  %687 = vmatprep.mubr.f32.mxu1 %v2927_v0 }
  0x95   : > { %1969 = vmatmul.mubr.msk.f32.gmra.mrb[18].mxu0 %vm383_vm0, %v360_v26  ;;  %1981 = vmatmul.mubr.msk.f32.gmra.mrb[18].mxu1 %vm383_vm0, %v356_v22  ;;  %v1134_v22 = vld [vmem:[#allocation5 + $0x48] sm:$0xff] }
  0x96   : > { %556 = vmatprep.mubr.f32.mxu0 %v2927_v0  ;;  %693 = vmatprep.mubr.f32.mxu1 %v2927_v0 }
  0x99   : > { %1970 = vmatmul.mubr.msk.f32.gmra.mrb[20].mxu0 %vm383_vm0, %v361_v27  ;;  %1982 = vmatmul.mubr.msk.f32.gmra.mrb[20].mxu1 %vm383_vm0, %v357_v23 }
  0x9a   : > { %562 = vmatprep.mubr.f32.mxu0 %v2927_v0  ;;  %699 = vmatprep.mubr.f32.mxu1 %v2927_v0 }
  0x9d   : > { %1971 = vmatmul.mubr.msk.f32.gmra.mrb[22].mxu0 %vm383_vm0, %v362_v28  ;;  %1983 = vmatmul.mubr.msk.f32.gmra.mrb[22].mxu1 %vm383_vm0, %v358_v24  ;;  %v2577_v24 = vpack.c.bf16 %v1134_v22, %v1133_v21 }
  0x9e   : > { %2214 = vmatprep.mubr.f32.mxu0 %v771_v41  ;;  %705 = vmatprep.mubr.f32.mxu1 %v2927_v0 }
  0x9f   : > { %2578 = vmatprep.subr.bf16.mxu1 %v2577_v24 }
  0xa0   : > { %2580 = vmatpush3.bf16.msra.mxu1 %v2577_v24 }
  0xa1   : > { %1984 = vmatmul.mubr.msk.f32.gmra.mrb[24].mxu1 %vm383_vm0, %v359_v25  ;;  %2582 = vmatprep.subr.bf16.mxu1 %v2581_v33 }
  0xa2   : > { %711 = vmatprep.mubr.f32.mxu1 %v2927_v0 }
  0xa4   : > { %2584 = vmatpush3.bf16.msra.mxu1 %v2581_v33 }
  0xa5   : > { %1985 = vmatmul.mubr.msk.f32.gmra.mrb[26].mxu1 %vm383_vm0, %v360_v26  ;;  %2586 = vmatprep.subr.bf16.mxu1 %v2585_v42 }
  0xa6   : > { %717 = vmatprep.mubr.f32.mxu1 %v2927_v0 }
  0xa8   : > { %2588 = vmatpush3.bf16.msra.mxu1 %v2585_v42 }
  0xa9   : > { %1986 = vmatmul.mubr.msk.f32.gmra.mrb[28].mxu1 %vm383_vm0, %v361_v27 }
  0xaa   : > { %723 = vmatprep.mubr.f32.mxu1 %v2927_v0 }
  0xad   : > { %1987 = vmatmul.mubr.msk.f32.gmra.mrb[30].mxu1 %vm383_vm0, %v362_v28 }
  0xae   : > { %729 = vmatprep.mubr.f32.mxu1 %v2927_v0 }
  0xb1   : > { %1988 = vmatmul.mubr.msk.f32.gmra.mrb[32].mxu1 %vm383_vm0, %v3171_v14 }
  0xb2   : > { %735 = vmatprep.mubr.f32.mxu1 %v2927_v0 }
  0xb5   : > { %1989 = vmatmul.mubr.msk.f32.gmra.mrb[34].mxu1 %vm383_vm0, %v3181_v16 }
  0xb6   : > { %741 = vmatprep.mubr.f32.mxu1 %v2927_v0 }
  0xb9   : > { %1990 = vmatmul.mubr.msk.f32.gmra.mrb[36].mxu1 %vm383_vm0, %v3190_v18 }
  0xba   : > { %747 = vmatprep.mubr.f32.mxu1 %v2927_v0 }
  0xbd   : > { %1991 = vmatmul.mubr.msk.f32.gmra.mrb[38].mxu1 %vm383_vm0, %v3199_v20 }
 0x144   : > { %v498_v51 = vpop.f32.mrb[0].mxu0  ;;  %v570_v52 = vpop.f32.mrb[0].mxu1 }
 0x145   : > { %v500_v53 = vpop.f32.mrb[1].mxu0  ;;  %v572_v54 = vpop.f32.mrb[1].mxu1 }
 0x148   : > { %v504_v55 = vpop.f32.mrb[2].mxu0  ;;  %v576_v56 = vpop.f32.mrb[2].mxu1 }
 0x149   : > { %v3289_v57 = vpack.c.bf16 %v504_v55, %v498_v51  ;;  %v506_v58 = vpop.f32.mrb[3].mxu0  ;;  %v3291_v59 = vpack.c.bf16 %v576_v56, %v570_v52  ;;  %v578_v60 = vpop.f32.mrb[3].mxu1  ;;  %v775_v51 = vld [vmem:[#allocation2 + $0xa0] sm:$0xff]  ;;  %v776_v52 = vld [vmem:[#allocation2 + $0xa8] sm:$0xff] }
 0x14a   : > { %v2497_v61 = vpack.c.bf16 %v506_v58, %v500_v53  ;;  %v3293_v62 = vpack.c.bf16 %v578_v60, %v572_v54  ;;  %v777_v53 = vld [vmem:[#allocation2 + $0xb0] sm:$0xff]  ;;  %v778_v54 = vld [vmem:[#allocation2 + $0xb8] sm:$0xff]  ;;  %v779_v55 = vld [vmem:[#allocation2 + $0xc0] sm:$0xff] }
 0x14b   : > { %v780_v56 = vld [vmem:[#allocation2 + $0xc8] sm:$0xff]  ;;  %v782_v58 = vld [vmem:[#allocation2 + $0xd8] sm:$0xff]  ;;  %v783_v60 = vld [vmem:[#allocation2 + $0xe0] sm:$0xff] }
 0x14c   : > { %v510_v63 = vpop.f32.mrb[4].mxu0  ;;  %2498 = vmatprep.subr.bf16.mxu0 %v2497_v61  ;;  %v582_v1 = vpop.f32.mrb[4].mxu1 }
 0x14d   : > { %v512_v2 = vpop.f32.mrb[5].mxu0  ;;  %2500 = vmatpush3.bf16.msra.mxu0 %v2497_v61  ;;  %v584_v3 = vpop.f32.mrb[5].mxu1  ;;  %v784_v61 = vld [vmem:[#allocation2 + $0xe8] sm:$0xff] }
 0x150   : > { %v516_v4 = vpop.f32.mrb[6].mxu0  ;;  %v588_v5 = vpop.f32.mrb[6].mxu1 }
 0x151   : > { %v3295_v6 = vpack.c.bf16 %v516_v4, %v510_v63  ;;  %v518_v7 = vpop.f32.mrb[7].mxu0  ;;  %v3297_v8 = vpack.c.bf16 %v588_v5, %v582_v1  ;;  %v590_v9 = vpop.f32.mrb[7].mxu1  ;;  %v786_v63 = vld [vmem:[#allocation2 + $0xf8] sm:$0xff]  ;;  %v754_v1 = vld [vmem:[#allocation2] sm:$0xff] }
 0x152   : > { %v2501_v10 = vpack.c.bf16 %v518_v7, %v512_v2  ;;  %v2525_v11 = vpack.c.bf16 %v590_v9, %v584_v3  ;;  %v755_v2 = vld [vmem:[#allocation2 + $0x8] sm:$0xff]  ;;  %v756_v3 = vld [vmem:[#allocation2 + $0x10] sm:$0xff]  ;;  %v757_v4 = vld [vmem:[#allocation2 + $0x18] sm:$0xff] }
 0x153   : > { %v758_v5 = vld [vmem:[#allocation2 + $0x20] sm:$0xff]  ;;  %v760_v7 = vld [vmem:[#allocation2 + $0x30] sm:$0xff] }
 0x154   : > { %v522_v14 = vpop.f32.mrb[8].mxu0  ;;  %2502 = vmatprep.subr.bf16.mxu0 %v2501_v10  ;;  %v762_v9 = vld [vmem:[#allocation2 + $0x40] sm:$0xff] }
 0x155   : > { %v524_v16 = vpop.f32.mrb[9].mxu0  ;;  %2504 = vmatpush3.bf16.msra.mxu0 %v2501_v10  ;;  %v763_v10 = vld [vmem:[#allocation2 + $0x48] sm:$0xff] }
 0x158   : > { %v528_v17 = vpop.f32.mrb[10].mxu0 }
 0x159   : > { %v3299_v18 = vpack.c.bf16 %v528_v17, %v522_v14  ;;  %v530_v19 = vpop.f32.mrb[11].mxu0  ;;  %v768_v14 = vld [vmem:[#allocation2 + $0x70] sm:$0xff] }
 0x15a   : > { %v2505_v20 = vpack.c.bf16 %v530_v19, %v524_v16  ;;  %v3313_v16 = vpop.f32.mrb[8].mxu1 }
 0x15b   : > { %v3315_v17 = vpop.f32.mrb[9].mxu1 }
 0x15c   : > { %v534_v23 = vpop.f32.mrb[12].mxu0  ;;  %2506 = vmatprep.subr.bf16.mxu0 %v2505_v20 }
 0x15d   : > { %v536_v25 = vpop.f32.mrb[13].mxu0  ;;  %2508 = vmatpush3.bf16.msra.mxu0 %v2505_v20 }
 0x160   : > { %v540_v26 = vpop.f32.mrb[14].mxu0 }
 0x161   : > { %v2541_v27 = vpack.c.bf16 %v540_v26, %v534_v23  ;;  %v542_v28 = vpop.f32.mrb[15].mxu0 }
 0x162   : > { %v2509_v29 = vpack.c.bf16 %v542_v28, %v536_v25 }
 0x164   : > { %v546_v32 = vpop.f32.mrb[16].mxu0  ;;  %2510 = vmatprep.subr.bf16.mxu0 %v2509_v29 }
 0x165   : > { %v548_v34 = vpop.f32.mrb[17].mxu0  ;;  %2512 = vmatpush3.bf16.msra.mxu0 %v2509_v29 }
 0x168   : > { %v552_v35 = vpop.f32.mrb[18].mxu0 }
 0x169   : > { %v2545_v36 = vpack.c.bf16 %v552_v35, %v546_v32  ;;  %v554_v37 = vpop.f32.mrb[19].mxu0 }
 0x16a   : > { %v2513_v38 = vpack.c.bf16 %v554_v37, %v548_v34  ;;  %v1140_v37 = vld [vmem:[#allocation5 + $0x78] sm:$0xff] }
 0x16c   : > { %v558_v41 = vpop.f32.mrb[20].mxu0  ;;  %2514 = vmatprep.subr.bf16.mxu0 %v2513_v38 }
 0x16d   : > { %v560_v43 = vpop.f32.mrb[21].mxu0  ;;  %2516 = vmatpush3.bf16.msra.mxu0 %v2513_v38 }
 0x170   : > { %v564_v44 = vpop.f32.mrb[22].mxu0 }
 0x171   : > { %v2549_v45 = vpack.c.bf16 %v564_v44, %v558_v41  ;;  %v566_v46 = vpop.f32.mrb[23].mxu0 }
 0x172   : > { %v2517_v47 = vpack.c.bf16 %v566_v46, %v560_v43  ;;  %v2928_v43 = vmov 0.0|0.0  }
 0x174   : > { %2518 = vmatprep.subr.bf16.mxu0 %v2517_v47 }
 0x175   : > { %2520 = vmatpush3.bf16.msra.mxu0 %v2517_v47 }
 0x176   : > { %2522 = vmatprep.subr.bf16.mxu0 %v3293_v62 }
 0x179   : > { %2524 = vmatpush3.bf16.msra.mxu0 %v3293_v62  ;;  %v785_v62 = vld [vmem:[#allocation2 + $0xf0] sm:$0xff] }
 0x17a   : > { %2526 = vmatprep.subr.bf16.mxu0 %v2525_v11 }
 0x17d   : > { %2528 = vmatpush3.bf16.msra.mxu0 %v2525_v11  ;;  %v764_v11 = vld [vmem:[#allocation2 + $0x50] sm:$0xff] }
 0x17e   : > { %2530 = vmatprep.subr.bf16.mxu0 %v3289_v57 }
 0x180   : > { %2215 = vmatmul.mubr.f32.vlgmr.msra.gmra.mrb[24].mxu0 %v772_v48 }
 0x181   : > { %2532 = vmatpush3.bf16.msra.mxu0 %v3289_v57  ;;  %2217 = vmatprep.mubr.f32.mxu0 %v773_v49  ;;  %v781_v57 = vld [vmem:[#allocation2 + $0xd0] sm:$0xff] }
 0x182   : > { %2534 = vmatprep.subr.bf16.mxu0 %v3295_v6 }
 0x184   : > { %2218 = vmatmul.mubr.f32.gmra.mrb[26].mxu0 %v774_v50 }
 0x185   : > { %2536 = vmatpush3.bf16.msra.mxu0 %v3295_v6  ;;  %2220 = vmatprep.mubr.f32.mxu0 %v775_v51  ;;  %v759_v6 = vld [vmem:[#allocation2 + $0x28] sm:$0xff] }
 0x186   : > { %2538 = vmatprep.subr.bf16.mxu0 %v3299_v18 }
 0x188   : > { %2221 = vmatmul.mubr.f32.gmra.mrb[28].mxu0 %v776_v52 }
 0x189   : > { %2540 = vmatpush3.bf16.msra.mxu0 %v3299_v18  ;;  %2223 = vmatprep.mubr.f32.mxu0 %v777_v53  ;;  %v3317_v18 = vpop.f32.mrb[10].mxu1 }
 0x18a   : > { %2542 = vmatprep.subr.bf16.mxu0 %v2541_v27  ;;  %v3319_v19 = vpop.f32.mrb[11].mxu1 }
 0x18b   : > { %v2594_v20 = vpack.c.bf16 %v3319_v19, %v3315_v17  ;;  %v3323_v21 = vpop.f32.mrb[12].mxu1 }
 0x18c   : > { %2224 = vmatmul.mubr.f32.gmra.mrb[30].mxu0 %v778_v54  ;;  %v3325_v22 = vpop.f32.mrb[13].mxu1 }
 0x18d   : > { %2544 = vmatpush3.bf16.msra.mxu0 %v2541_v27  ;;  %2226 = vmatprep.mubr.f32.mxu0 %v779_v55  ;;  %v3327_v23 = vpop.f32.mrb[14].mxu1 }
 0x18e   : > { %2546 = vmatprep.subr.bf16.mxu0 %v2545_v36  ;;  %v3329_v24 = vpop.f32.mrb[15].mxu1 }
 0x18f   : > { %v2597_v25 = vpack.c.bf16 %v3329_v24, %v3325_v22  ;;  %v3333_v26 = vpop.f32.mrb[16].mxu1 }
 0x190   : > { %2227 = vmatmul.mubr.f32.gmra.mrb[32].mxu0 %v780_v56  ;;  %v3335_v27 = vpop.f32.mrb[17].mxu1 }
 0x191   : > { %2548 = vmatpush3.bf16.msra.mxu0 %v2545_v36  ;;  %2229 = vmatprep.mubr.f32.mxu0 %v781_v57  ;;  %v3337_v28 = vpop.f32.mrb[18].mxu1  ;;  %v1139_v36 = vld [vmem:[#allocation5 + $0x70] sm:$0xff] }
 0x192   : > { %2550 = vmatprep.subr.bf16.mxu0 %v2549_v45  ;;  %v3339_v29 = vpop.f32.mrb[19].mxu1  ;;  %v2589_v38 = vpack.c.bf16 %v1140_v37, %v1139_v36 }
 0x193   : > { %v2600_v30 = vpack.c.bf16 %v3339_v29, %v3335_v27  ;;  %v3343_v31 = vpop.f32.mrb[20].mxu1 }
 0x194   : > { %2230 = vmatmul.mubr.f32.gmra.mrb[34].mxu0 %v782_v58  ;;  %v3345_v32 = vpop.f32.mrb[21].mxu1  ;;  %2590 = vmatprep.subr.bf16.mxu1 %v2589_v38 }
 0x195   : > { %2552 = vmatpush3.bf16.msra.mxu0 %v2549_v45  ;;  %2232 = vmatprep.mubr.f32.mxu0 %v783_v60  ;;  %v3347_v33 = vpop.f32.mrb[22].mxu1 }
 0x196   : > { %2554 = vmatprep.subr.bf16.mxu0 %v3291_v59  ;;  %v3349_v34 = vpop.f32.mrb[23].mxu1  ;;  %2592 = vmatpush3.bf16.msra.mxu1 %v2589_v38 }
 0x197   : > { %v2603_v35 = vpack.c.bf16 %v3349_v34, %v3345_v32  ;;  %v3353_v39 = vpop.f32.mrb[24].mxu1  ;;  %2593 = vmatprep.subr.bf16.mxu1 %v2928_v43 }
 0x198   : > { %2233 = vmatmul.mubr.f32.gmra.mrb[36].mxu0 %v784_v61  ;;  %v3355_v40 = vpop.f32.mrb[25].mxu1  ;;  %v1078_v61 = vld [vmem:[%s3800_s7 + $0x8] sm:$0xff] }
 0x199   : > { %2556 = vmatpush3.bf16.msra.mxu0 %v3291_v59  ;;  %2235 = vmatprep.mubr.f32.mxu0 %v785_v62  ;;  %v761_v59 = vld [vmem:[#allocation2 + $0x38] sm:$0xff]  ;;  %v3357_v41 = vpop.f32.mrb[26].mxu1  ;;  %v1077_v62 = vld [vmem:[%s3800_s7] sm:$0xff] }
 0x19a   : > { %2558 = vmatprep.subr.bf16.mxu0 %v3297_v8  ;;  %v3359_v42 = vpop.f32.mrb[27].mxu1 }
 0x19b   : > { %v2606_v44 = vpack.c.bf16 %v3359_v42, %v3355_v40  ;;  %v3365_v45 = vpop.f32.mrb[28].mxu1 }
 0x19c   : > { %2236 = vmatmul.mubr.f32.gmra.mrb[38].mxu0 %v786_v63  ;;  %v3367_v46 = vpop.f32.mrb[29].mxu1 }
 0x19d   : > { %2560 = vmatpush3.bf16.msra.mxu0 %v3297_v8  ;;  %2270 = vmatprep.mubr.f32.mxu0 %v754_v1  ;;  %v765_v8 = vld [vmem:[#allocation2 + $0x58] sm:$0xff]  ;;  %v3369_v47 = vpop.f32.mrb[30].mxu1 }
 0x19e   : > { %2617 = vmatprep.subr.bf16.mxu0 %v2928_v43  ;;  %v3371_v48 = vpop.f32.mrb[31].mxu1 }
 0x19f   : > { %v2609_v49 = vpack.c.bf16 %v3371_v48, %v3367_v46  ;;  %v3375_v50 = vpop.f32.mrb[32].mxu1  ;;  %v1312_v46 = vld [vmem:[%s3798_s5] sm:$0xff] }
 0x1a0   : > { %2271 = vmatmul.mubr.f32.vlgmr.msra.gmra.mrb[24].mxu0 %v755_v2  ;;  %v3377_v51 = vpop.f32.mrb[33].mxu1  ;;  %v1383_v48 = vld [vmem:[#allocation7] sm:$0xff] }
 0x1a1   : > { %2273 = vmatprep.mubr.f32.mxu0 %v756_v3  ;;  %v3379_v52 = vpop.f32.mrb[34].mxu1 }
 0x1a2   : > { %v3381_v53 = vpop.f32.mrb[35].mxu1 }
 0x1a3   : > { %v2612_v54 = vpack.c.bf16 %v3381_v53, %v3377_v51  ;;  %v3385_v55 = vpop.f32.mrb[36].mxu1  ;;  %v1385_v53 = vld [vmem:[#allocation7 + $0x10] sm:$0xff] }
 0x1a4   : > { %2274 = vmatmul.mubr.f32.gmra.mrb[26].mxu0 %v757_v4  ;;  %v3387_v56 = vpop.f32.mrb[37].mxu1  ;;  %v1080_v4 = vld [vmem:[%s3800_s7 + $0x18] sm:$0xff] }
 0x1a5   : > { %2276 = vmatprep.mubr.f32.mxu0 %v758_v5  ;;  %v3389_v57 = vpop.f32.mrb[38].mxu1  ;;  %v1079_v5 = vld [vmem:[%s3800_s7 + $0x10] sm:$0xff] }
 0x1a6   : > { %v3391_v58 = vpop.f32.mrb[39].mxu1 }
 0x1a7   : > { %v2615_v60 = vpack.c.bf16 %v3391_v58, %v3387_v56  ;;  %v1387_v58 = vld [vmem:[#allocation7 + $0x20] sm:$0xff] }
 0x1a8   : > { %2277 = vmatmul.mubr.f32.gmra.mrb[28].mxu0 %v759_v6 }
 0x1a9   : > { %2279 = vmatprep.mubr.f32.mxu0 %v760_v7 }
 0x1ac   : > { %2280 = vmatmul.mubr.f32.gmra.mrb[30].mxu0 %v761_v59 }
 0x1ad   : > { %2282 = vmatprep.mubr.f32.mxu0 %v762_v9 }
 0x1b0   : > { %2283 = vmatmul.mubr.f32.gmra.mrb[32].mxu0 %v763_v10 }
 0x1b1   : > { %2285 = vmatprep.mubr.f32.mxu0 %v764_v11 }
 0x1b4   : > { %2286 = vmatmul.mubr.f32.gmra.mrb[34].mxu0 %v765_v8  ;;  %v1082_v8 = vld [vmem:[%s3800_s7 + $0x28] sm:$0xff] }
 0x1b5   : > { %2288 = vmatprep.mubr.f32.mxu0 %v766_v12  ;;  %v1081_v12 = vld [vmem:[%s3800_s7 + $0x20] sm:$0xff] }
 0x1b8   : > { %2289 = vmatmul.mubr.f32.gmra.mrb[36].mxu0 %v767_v13 }
 0x1b9   : > { %2291 = vmatprep.mubr.f32.mxu0 %v768_v14 }
 0x1bc   : > { %2292 = vmatmul.mubr.f32.gmra.mrb[38].mxu0 %v769_v15 }
 0x1bd   : > { %2417 = vmatprep.mubr.msk.f32.mxu0 %vm2929_vm1, %v2927_v0 }
 0x273   : > { %v2272_v63 = vpop.f32.mrb[24].mxu0 }
 0x274   : > { %v1094_v1 = vadd.f32 %v2272_v63, %v1078_v61  ;;  %v998_v2 = vpop.f32.mrb[25].mxu0  ;;  %v1084_v61 = vld [vmem:[%s3800_s7 + $0x38] sm:$0xff] }
 0x275   : > { %v1093_v3 = vadd.f32 %v1077_v62, %v998_v2  ;;  %v1083_v62 = vld [vmem:[%s3800_s7 + $0x30] sm:$0xff] }
 0x276   : > { %v1110_v59 = vmax.f32 %v1094_v1, 0.0 }
 0x277   : > { %v1109_v6 = vmax.f32 %v1093_v3, 0.0  ;;  %v2275_v7 = vpop.f32.mrb[26].mxu0  ;;  %v1086_v3 = vld [vmem:[%s3800_s7 + $0x48] sm:$0xff] }
 0x278   : > { %v1096_v9 = vadd.f32 %v2275_v7, %v1080_v4  ;;  %v1008_v10 = vpop.f32.mrb[27].mxu0  ;;  %v1085_v4 = vld [vmem:[%s3800_s7 + $0x40] sm:$0xff] }
 0x279   : > { %v1095_v11 = vadd.f32 %v1079_v5, %v1008_v10  ;;  %2326 = vmatprep.mubr.f32.mxu1 %v1109_v6 }
 0x27a   : > { %2327 = vmatmul.mubr.f32.vlgmr.msra.gmra.mrb[40].mxu1 %v1110_v59  ;;  %v1112_v15 = vmax.f32 %v1096_v9, 0.0  ;;  %v1088_v59 = vld [vmem:[%s3800_s7 + $0x58] sm:$0xff]  ;;  %v1087_v9 = vld [vmem:[%s3800_s7 + $0x50] sm:$0xff] }
 0x27b   : > { %v1111_v13 = vmax.f32 %v1095_v11, 0.0  ;;  %2595 = vmatpush3.bf16.msra.mxu1 %v2594_v20  ;;  %v2278_v14 = vpop.f32.mrb[28].mxu0 }
 0x27c   : > { %v1098_v36 = vadd.f32 %v2278_v14, %v1082_v8  ;;  %v1018_v37 = vpop.f32.mrb[29].mxu0  ;;  %2596 = vmatprep.subr.bf16.mxu1 %v2928_v43 }
 0x27d   : > { %v1097_v38 = vadd.f32 %v1081_v12, %v1018_v37  ;;  %2329 = vmatprep.mubr.f32.mxu1 %v1111_v13  ;;  %v1090_v12 = vld [vmem:[%s3800_s7 + $0x68] sm:$0xff]  ;;  %v1089_v13 = vld [vmem:[%s3800_s7 + $0x60] sm:$0xff]  ;;  %v1092_v37 = vld [vmem:[%s3800_s7 + $0x78] sm:$0xff] }
 0x27e   : > { %2330 = vmatmul.mubr.f32.gmra.mrb[42].mxu1 %v1112_v15  ;;  %v1114_v19 = vmax.f32 %v1098_v36, 0.0 }
 0x27f   : > { %v1113_v63 = vmax.f32 %v1097_v38, 0.0  ;;  %2598 = vmatpush3.bf16.msra.mxu1 %v2597_v25  ;;  %v2281_v17 = vpop.f32.mrb[30].mxu0  ;;  %v1091_v38 = vld [vmem:[%s3800_s7 + $0x70] sm:$0xff] }
 0x280   : > { %v1100_v20 = vadd.f32 %v2281_v17, %v1084_v61  ;;  %v1028_v1 = vpop.f32.mrb[31].mxu0  ;;  %2599 = vmatprep.subr.bf16.mxu1 %v2928_v43 }
 0x281   : > { %v1099_v2 = vadd.f32 %v1083_v62, %v1028_v1  ;;  %2332 = vmatprep.mubr.f32.mxu1 %v1113_v63  ;;  %v1389_v1 = vld [vmem:[#allocation7 + $0x30] sm:$0xff] }
 0x282   : > { %2333 = vmatmul.mubr.f32.gmra.mrb[44].mxu1 %v1114_v19  ;;  %v1116_v24 = vmax.f32 %v1100_v20, 0.0 }
 0x283   : > { %v1115_v5 = vmax.f32 %v1099_v2, 0.0  ;;  %2601 = vmatpush3.bf16.msra.mxu1 %v2600_v30  ;;  %v2284_v22 = vpop.f32.mrb[32].mxu0 }
 0x284   : > { %v1102_v25 = vadd.f32 %v2284_v22, %v1086_v3  ;;  %v1038_v6 = vpop.f32.mrb[33].mxu0  ;;  %2602 = vmatprep.subr.bf16.mxu1 %v2928_v43  ;;  %v1391_v3 = vld [vmem:[#allocation7 + $0x40] sm:$0xff]  ;;  %v1393_v22 = vld [vmem:[#allocation7 + $0x50] sm:$0xff] }
 0x285   : > { %v1101_v7 = vadd.f32 %v1085_v4, %v1038_v6  ;;  %2335 = vmatprep.mubr.f32.mxu1 %v1115_v5  ;;  %v1392_v4 = vld [vmem:[#allocation7 + $0x48] sm:$0xff]  ;;  %v1395_v6 = vld [vmem:[#allocation7 + $0x60] sm:$0xff] }
 0x286   : > { %2336 = vmatmul.mubr.f32.gmra.mrb[46].mxu1 %v1116_v24  ;;  %v1118_v29 = vmax.f32 %v1102_v25, 0.0  ;;  %v2630_v5 = vpack.c.bf16 %v1392_v4, %v1391_v3  ;;  %v1394_v24 = vld [vmem:[#allocation7 + $0x58] sm:$0xff]  ;;  %v1490_v3 = vld [vmem:[%s3800_s7 + $0xe8] sm:$0xff]  ;;  %v1491_v4 = vld [vmem:[%s3800_s7 + $0xf0] sm:$0xff] }
 0x287   : > { %v1117_v10 = vmax.f32 %v1101_v7, 0.0  ;;  %2604 = vmatpush3.bf16.msra.mxu1 %v2603_v35  ;;  %v2287_v27 = vpop.f32.mrb[34].mxu0  ;;  %v2633_v25 = vpack.c.bf16 %v1394_v24, %v1393_v22  ;;  %v1396_v7 = vld [vmem:[#allocation7 + $0x68] sm:$0xff]  ;;  %v1492_v22 = vld [vmem:[%s3800_s7 + $0xf8] sm:$0xff]  ;;  %v1493_v24 = vld [vmem:[%s3800_s7 + $0x100] sm:$0xff] }
 0x288   : > { %v1104_v30 = vadd.f32 %v2287_v27, %v1088_v59  ;;  %v1048_v11 = vpop.f32.mrb[35].mxu0  ;;  %2605 = vmatprep.subr.bf16.mxu1 %v2928_v43  ;;  %v2636_v59 = vpack.c.bf16 %v1396_v7, %v1395_v6  ;;  %v1494_v6 = vld [vmem:[%s3800_s7 + $0x108] sm:$0xff]  ;;  %v1495_v7 = vld [vmem:[%s3800_s7 + $0x110] sm:$0xff] }
 0x289   : > { %v1103_v8 = vadd.f32 %v1087_v9, %v1048_v11  ;;  %2338 = vmatprep.mubr.f32.mxu1 %v1117_v10  ;;  %v1397_v9 = vld [vmem:[#allocation7 + $0x70] sm:$0xff]  ;;  %v1398_v10 = vld [vmem:[#allocation7 + $0x78] sm:$0xff] }
 0x28a   : > { %2339 = vmatmul.mubr.f32.gmra.mrb[48].mxu1 %v1118_v29  ;;  %v1120_v34 = vmax.f32 %v1104_v30, 0.0  ;;  %v2639_v27 = vpack.c.bf16 %v1398_v10, %v1397_v9  ;;  %v1480_v29 = vld [vmem:[%s3800_s7 + $0x98] sm:$0xff]  ;;  %v1481_v30 = vld [vmem:[%s3800_s7 + $0xa0] sm:$0xff]  ;;  %v1994_v9 = vld [vmem:[%s3800_s7 + $0x90] ss:$0 sm:$0xff] }
 0x28b   : > { %v1119_v14 = vmax.f32 %v1103_v8, 0.0  ;;  %2607 = vmatpush3.bf16.msra.mxu1 %v2606_v44  ;;  %v2290_v32 = vpop.f32.mrb[36].mxu0  ;;  %v2642_v11 = vpack.c.bf16 %v1481_v30, %v1480_v29 }
 0x28c   : > { %v1106_v35 = vadd.f32 %v2290_v32, %v1090_v12  ;;  %v1058_v15 = vpop.f32.mrb[37].mxu0  ;;  %2608 = vmatprep.subr.bf16.mxu1 %v2928_v43 }
 0x28d   : > { %v1105_v36 = vadd.f32 %v1089_v13, %v1058_v15  ;;  %2341 = vmatprep.mubr.f32.mxu1 %v1119_v14 }
 0x28e   : > { %2342 = vmatmul.mubr.f32.gmra.mrb[50].mxu1 %v1120_v34  ;;  %v1122_v42 = vmax.f32 %v1106_v35, 0.0 }
 0x28f   : > { %v1121_v61 = vmax.f32 %v1105_v36, 0.0  ;;  %2610 = vmatpush3.bf16.msra.mxu1 %v2609_v49  ;;  %v2293_v40 = vpop.f32.mrb[38].mxu0  ;;  %v1384_v49 = vld [vmem:[#allocation7 + $0x8] sm:$0xff] }
 0x290   : > { %v1108_v44 = vadd.f32 %v2293_v40, %v1092_v37  ;;  %v1068_v62 = vpop.f32.mrb[39].mxu0  ;;  %2611 = vmatprep.subr.bf16.mxu1 %v2928_v43  ;;  %v2618_v51 = vpack.c.bf16 %v1384_v49, %v1383_v48  ;;  %v1482_v48 = vld [vmem:[%s3800_s7 + $0xa8] sm:$0xff]  ;;  %v1483_v49 = vld [vmem:[%s3800_s7 + $0xb0] sm:$0xff] }
 0x291   : > { %v1107_v63 = vadd.f32 %v1091_v38, %v1068_v62  ;;  %2344 = vmatprep.mubr.f32.mxu1 %v1121_v61 }
 0x292   : > { %2345 = vmatmul.mubr.f32.gmra.mrb[52].mxu1 %v1122_v42  ;;  %v1124_v19 = vmax.f32 %v1108_v44, 0.0  ;;  %2619 = vmatpush3.bf16.msra.mxu0 %v2618_v51  ;;  %v2645_v51 = vpack.c.bf16 %v1483_v49, %v1482_v48  ;;  %v1567_v48 = vld [vmem:[%s3799_s6 + $0x8] sm:$0xff] }
 0x293   : > { %v1123_v17 = vmax.f32 %v1107_v63, 0.0  ;;  %2613 = vmatpush3.bf16.msra.mxu1 %v2612_v54  ;;  %2620 = vmatprep.subr.bf16.mxu0 %v2928_v43  ;;  %v1386_v54 = vld [vmem:[#allocation7 + $0x18] sm:$0xff]  ;;  %v3533_v63 = vld [vmem:[%s3800_s7 + $0x88] ss:$0 sm:$0xff] }
 0x294   : > { %2614 = vmatprep.subr.bf16.mxu1 %v2928_v43  ;;  %v2621_v56 = vpack.c.bf16 %v1386_v54, %v1385_v53  ;;  %v1484_v53 = vld [vmem:[%s3800_s7 + $0xb8] sm:$0xff]  ;;  %v1485_v54 = vld [vmem:[%s3800_s7 + $0xc0] sm:$0xff] }
 0x295   : > { %2347 = vmatprep.mubr.f32.mxu1 %v1123_v17 }
 0x296   : > { %2348 = vmatmul.mubr.f32.gmra.mrb[54].mxu1 %v1124_v19  ;;  %2622 = vmatpush3.bf16.msra.mxu0 %v2621_v56  ;;  %v2648_v56 = vpack.c.bf16 %v1485_v54, %v1484_v53  ;;  %v1569_v53 = vld [vmem:[%s3799_s6 + $0x18] sm:$0xff]  ;;  %v1570_v54 = vld [vmem:[%s3799_s6 + $0x20] sm:$0xff] }
 0x297   : > { %2616 = vmatpush3.bf16.msra.mxu1 %v2615_v60  ;;  %2382 = vmatprep.mubr.msk.f32.mxu1 %vm2929_vm1, %v2927_v0  ;;  %v1388_v60 = vld [vmem:[#allocation7 + $0x28] sm:$0xff] }
 0x298   : > { %2641 = vmatprep.subr.bf16.mxu1 %v2928_v43  ;;  %2623 = vmatprep.subr.bf16.mxu0 %v2928_v43  ;;  %v2624_v20 = vpack.c.bf16 %v1388_v60, %v1387_v58  ;;  %v1486_v58 = vld [vmem:[%s3800_s7 + $0xc8] sm:$0xff]  ;;  %v1487_v60 = vld [vmem:[%s3800_s7 + $0xd0] sm:$0xff] }
 0x29a   : > { %2383 = vmatmul.mubr.f32.vlgmr.msra.gmra.mrb[56].mxu1 %v1312_v46  ;;  %2625 = vmatpush3.bf16.msra.mxu0 %v2624_v20  ;;  %v2651_v20 = vpack.c.bf16 %v1487_v60, %v1486_v58  ;;  %v1572_v58 = vld [vmem:[%s3799_s6 + $0x30] sm:$0xff]  ;;  %v1573_v60 = vld [vmem:[%s3799_s6 + $0x38] sm:$0xff] }
 0x29b   : > { %2452 = vmatprep.mubr.msk.f32.mxu1 %vm2929_vm1, %v2927_v0  ;;  %2626 = vmatprep.subr.bf16.mxu0 %v2928_v43  ;;  %v1390_v0 = vld [vmem:[#allocation7 + $0x38] sm:$0xff] }
 0x29c   : > { %v2627_v2 = vpack.c.bf16 %v1390_v0, %v1389_v1  ;;  %2643 = vmatpush3.bf16.msra.mxu1 %v2642_v11  ;;  %v1488_v1 = vld [vmem:[%s3800_s7 + $0xd8] sm:$0xff]  ;;  %v1489_v0 = vld [vmem:[%s3800_s7 + $0xe0] sm:$0xff] }
 0x29d   : > { %2644 = vmatprep.subr.bf16.mxu1 %v2928_v43 }
 0x29e   : > { %2628 = vmatpush3.bf16.msra.mxu0 %v2627_v2  ;;  %v2654_v2 = vpack.c.bf16 %v1489_v0, %v1488_v1  ;;  %v1575_v1 = vld [vmem:[%s3799_s6 + $0x48] sm:$0xff]  ;;  %v1576_v0 = vld [vmem:[%s3799_s6 + $0x50] sm:$0xff] }
 0x29f   : > { %2629 = vmatprep.subr.bf16.mxu0 %v2928_v43 }
 0x2a0   : > { %2646 = vmatpush3.bf16.msra.mxu1 %v2645_v51  ;;  %v1568_v51 = vld [vmem:[%s3799_s6 + $0x10] sm:$0xff] }
 0x2a1   : > { %2647 = vmatprep.subr.bf16.mxu1 %v2928_v43 }
 0x2a2   : > { %2631 = vmatpush3.bf16.msra.mxu0 %v2630_v5  ;;  %v2657_v5 = vpack.c.bf16 %v1491_v4, %v1490_v3  ;;  %v1578_v3 = vld [vmem:[%s3799_s6 + $0x60] sm:$0xff]  ;;  %v1579_v4 = vld [vmem:[%s3799_s6 + $0x68] sm:$0xff] }
 0x2a3   : > { %2632 = vmatprep.subr.bf16.mxu0 %v2928_v43 }
 0x2a4   : > { %2649 = vmatpush3.bf16.msra.mxu1 %v2648_v56  ;;  %v1571_v56 = vld [vmem:[%s3799_s6 + $0x28] sm:$0xff] }
 0x2a5   : > { %2650 = vmatprep.subr.bf16.mxu1 %v2928_v43 }
 0x2a6   : > { %2634 = vmatpush3.bf16.msra.mxu0 %v2633_v25  ;;  %v2660_v25 = vpack.c.bf16 %v1493_v24, %v1492_v22  ;;  %v1581_v22 = vld [vmem:[%s3799_s6 + $0x78] sm:$0xff]  ;;  %v3654_v24 = vld [vmem:[%s3800_s7 + $0x80] ss:$0 sm:$0xff] }
 0x2a7   : > { %2635 = vmatprep.subr.bf16.mxu0 %v2928_v43 }
 0x2a8   : > { %2652 = vmatpush3.bf16.msra.mxu1 %v2651_v20  ;;  %v1574_v20 = vld [vmem:[%s3799_s6 + $0x40] sm:$0xff] }
 0x2a9   : > { %2653 = vmatprep.subr.bf16.mxu1 %v2928_v43 }
 0x2aa   : > { %2637 = vmatpush3.bf16.msra.mxu0 %v2636_v59  ;;  %v2663_v59 = vpack.c.bf16 %v1495_v7, %v1494_v6  ;;  %v1296_v6 = vadd.f32 %v3533_v63, %v3313_v16 }
 0x2ab   : > { %2638 = vmatprep.subr.bf16.mxu0 %v2928_v43 }
 0x2ac   : > { %2655 = vmatpush3.bf16.msra.mxu1 %v2654_v2  ;;  %v1577_v2 = vld [vmem:[%s3799_s6 + $0x58] sm:$0xff] }
 0x2ad   : > { %2656 = vmatprep.subr.bf16.mxu1 %v2928_v43 }
 0x2ae   : > { %2640 = vmatpush3.bf16.msra.mxu0 %v2639_v27 }
 0x2b0   : > { %2658 = vmatpush3.bf16.msra.mxu1 %v2657_v5  ;;  %v1580_v5 = vld [vmem:[%s3799_s6 + $0x70] sm:$0xff] }
 0x2b1   : > { %2659 = vmatprep.subr.bf16.mxu1 %v2928_v43 }
 0x2b4   : > { %2661 = vmatpush3.bf16.msra.mxu1 %v2660_v25  ;;  %v1297_v25 = vadd.f32 %v3533_v63, %v3317_v18  ;;  %v1298_v18 = vadd.f32 %v3533_v63, %v3323_v21 }
 0x2b5   : > { %2662 = vmatprep.subr.bf16.mxu1 %v2928_v43 }
 0x2b8   : > { %2664 = vmatpush3.bf16.msra.mxu1 %v2663_v59 }
 0x34d   : > { %v3498_v8 = vpop.f32.mrb[40].mxu1 }
 0x34e   : > { %v3500_v12 = vpop.f32.mrb[41].mxu1  ;;  %v1218_v59 = vadd.f32 %v3498_v8, %v3654_v24 }
 0x351   : > { %v3502_v13 = vpop.f32.mrb[42].mxu1 }
 0x352   : > { %v3504_v14 = vpop.f32.mrb[43].mxu1  ;;  %v1228_v8 = vadd.f32 %v3502_v13, %v3654_v24  ;;  %v1300_v13 = vadd.f32 %v3533_v63, %v3333_v26 }
 0x355   : > { %v3506_v32 = vpop.f32.mrb[44].mxu1 }
 0x356   : > { %v3508_v34 = vpop.f32.mrb[45].mxu1 }
 0x359   : > { %v3510_v35 = vpop.f32.mrb[46].mxu1 }
 0x35a   : > { %v3512_v15 = vpop.f32.mrb[47].mxu1 }
 0x35d   : > { %v3514_v36 = vpop.f32.mrb[48].mxu1 }
 0x35e   : > { %v3516_v37 = vpop.f32.mrb[49].mxu1 }
 0x361   : > { %v3518_v38 = vpop.f32.mrb[50].mxu1 }
 0x362   : > { %v3520_v61 = vpop.f32.mrb[51].mxu1 }
 0x365   : > { %v3522_v40 = vpop.f32.mrb[52].mxu1 }
 0x366   : > { %v3524_v42 = vpop.f32.mrb[53].mxu1 }
 0x369   : > { %v3526_v44 = vpop.f32.mrb[54].mxu1 }
 0x36a   : > { %v3528_v62 = vpop.f32.mrb[55].mxu1 }
 0x36d   : > { %v1379_v17 = vpop.f32.mrb[56].mxu1 }
 0x36e   : > { %v1380_v19 = vadd.f32 %v3533_v63, %v1379_v17  ;;  %v2384_v46 = vpop.f32.mrb[57].mxu1 }
 0x36f   : > { %v1566_v46 = vld [vmem:[%s3799_s6] sm:$0xff] }
 0x370   : > { %2418 = vmatmul.mubr.f32.vlgmr.msra.gmra.mrb[40].mxu0 %v1380_v19 }
 0x371   : > { %2457 = vmatprep.mubr.msk.f32.mxu0 %vm1582_vm2, %v1566_v46 }
 0x443   : > { %v1470_v10 = vpop.f32.mrb[40].mxu0 }
 0x444   : > { %v1471_v27 = vadd.f32 %v1994_v9, %v1470_v10  ;;  %v2419_v29 = vpop.f32.mrb[41].mxu0 }
 0x446   : > { %v1995_v30 = vmul.f32 -1.442695, %v1471_v27  ;;  %v1213_v27 = vadd.f32 %v3654_v24, %v3500_v12 }
 0x448   : > { %2762 = vpow2.f32 %v1995_v30  ;;  %v1299_v30 = vadd.f32 %v3533_v63, %v3327_v23  ;;  %v1301_v23 = vadd.f32 %v3533_v63, %v3337_v28 }
 0x452   : > { %v2763_v11 = vpop.eup %2762 }
 0x453   : > { %v1477_v17 = vadd.f32 1.0, %v2763_v11 }
 0x455   : > { %2764 = vrcp.f32 %v1477_v17 }
 0x45f   : > { %v2765_v19 = vpop.eup %2764 }
 0x460   : > { %2453 = vmatmul.mubr.f32.vlgmr.msra.gmra.mrb[58].mxu1 %v2765_v19 }
 0x533   : > { %v1562_v43 = vpop.f32.mrb[58].mxu1 }
 0x534   : > { %2455 = vmatprep.subr.mxu0 %v1562_v43  ;;  %v2454_v49 = vpop.f32.mrb[59].mxu1 }
 0x535   : > { %2456 = vmatpush3.msra.mxu0 %v1562_v43 }
 0x536   : > { %2458 = vmatmul.mubr.msk.f32.vlgmr.msra.gmra.mrb[42].mxu0 %vm1582_vm2, %v1567_v48  ;;  %v1223_v48 = vadd.f32 %v3654_v24, %v3504_v14  ;;  %v1238_v14 = vadd.f32 %v3506_v32, %v3654_v24 }
 0x537   : > { %2460 = vmatprep.mubr.msk.f32.mxu0 %vm1582_vm2, %v1568_v51 }
 0x53a   : > { %2461 = vmatmul.mubr.msk.f32.gmra.mrb[44].mxu0 %vm1582_vm2, %v1569_v53 }
 0x53b   : > { %2463 = vmatprep.mubr.msk.f32.mxu0 %vm1582_vm2, %v1570_v54 }
 0x53e   : > { %2464 = vmatmul.mubr.msk.f32.gmra.mrb[46].mxu0 %vm1582_vm2, %v1571_v56 }
 0x53f   : > { %2466 = vmatprep.mubr.msk.f32.mxu0 %vm1582_vm2, %v1572_v58  ;;  %v1233_v58 = vadd.f32 %v3654_v24, %v3508_v34 }
 0x542   : > { %2467 = vmatmul.mubr.msk.f32.gmra.mrb[48].mxu0 %vm1582_vm2, %v1573_v60 }
 0x543   : > { %2469 = vmatprep.mubr.msk.f32.mxu0 %vm1582_vm2, %v1574_v20 }
 0x546   : > { %2470 = vmatmul.mubr.msk.f32.gmra.mrb[50].mxu0 %vm1582_vm2, %v1575_v1  ;;  %v1303_v1 = vadd.f32 %v3533_v63, %v3347_v33 }
 0x547   : > { %2472 = vmatprep.mubr.msk.f32.mxu0 %vm1582_vm2, %v1576_v0  ;;  %v1302_v0 = vadd.f32 %v3533_v63, %v3343_v31 }
 0x54a   : > { %2473 = vmatmul.mubr.msk.f32.gmra.mrb[52].mxu0 %vm1582_vm2, %v1577_v2 }
 0x54b   : > { %2475 = vmatprep.mubr.msk.f32.mxu0 %vm1582_vm2, %v1578_v3  ;;  %v1248_v3 = vadd.f32 %v3510_v35, %v3654_v24 }
 0x54e   : > { %2476 = vmatmul.mubr.msk.f32.gmra.mrb[54].mxu0 %vm1582_vm2, %v1579_v4 }
 0x54f   : > { %2478 = vmatprep.mubr.msk.f32.mxu0 %vm1582_vm2, %v1580_v5 }
 0x552   : > { %2479 = vmatmul.mubr.msk.f32.gmra.mrb[56].mxu0 %vm1582_vm2, %v1581_v22  ;;  %v1243_v22 = vadd.f32 %v3654_v24, %v3512_v15 }
 0x609   : > { %v2459_v7 = vpop.f32.mrb[42].mxu0 }
 0x60a   : > { %v1777_v9 = vmul.f32 %v2459_v7, %v1297_v25  ;;  %v1697_v10 = vpop.f32.mrb[43].mxu0  ;;  %v1304_v7 = vadd.f32 %v3533_v63, %v3353_v39 }
 0x60b   : > { %v1776_v29 = vmul.f32 %v1697_v10, %v1296_v6  ;;  %v1305_v6 = vadd.f32 %v3533_v63, %v3357_v41 }
 0x60c   : > { %v1793_v11 = vadd.f32 %v1777_v9, %v1218_v59  ;;  %v1258_v9 = vadd.f32 %v3514_v36, %v3654_v24 }
 0x60d   : > { %v1792_v16 = vadd.f32 %v1776_v29, %v1213_v27  ;;  %v2462_v17 = vpop.f32.mrb[44].mxu0  ;;  %v1253_v29 = vadd.f32 %v3654_v24, %v3516_v37 }
 0x60e   : > { %v1809_v19 = vmax.f32 %v1793_v11, 0.0  ;;  %v1779_v46 = vmul.f32 %v2462_v17, %v1299_v30  ;;  %v1707_v43 = vpop.f32.mrb[45].mxu0  ;;  %v1307_v11 = vadd.f32 %v3533_v63, %v3369_v47  ;;  %v1268_v17 = vadd.f32 %v3518_v38, %v3654_v24 }
 0x60f   : > { %v1808_v12 = vmax.f32 %v1792_v16, 0.0  ;;  %v1778_v49 = vmul.f32 %v1707_v43, %v1298_v18  ;;  %v1306_v18 = vadd.f32 %v3533_v63, %v3365_v45 }
 0x610   : > { %1825 = vst [vmem:[%s3677_s14 + $0x8] sm:$0xff] %v1809_v19  ;;  %v1795_v21 = vadd.f32 %v1779_v46, %v1228_v8  ;;  %v1263_v46 = vadd.f32 %v3654_v24, %v3520_v61 }
 0x611   : > { %1824 = vst [vmem:[%s3677_s14] sm:$0xff] %v1808_v12  ;;  %v1794_v51 = vadd.f32 %v1778_v49, %v1223_v48  ;;  %v2465_v53 = vpop.f32.mrb[46].mxu0  ;;  %v1309_v48 = vadd.f32 %v3533_v63, %v3379_v52  ;;  %v1308_v12 = vadd.f32 %v3533_v63, %v3375_v50 }
 0x612   : > { %v1811_v54 = vmax.f32 %v1795_v21, 0.0  ;;  %v1781_v56 = vmul.f32 %v2465_v53, %v1301_v23  ;;  %v1717_v28 = vpop.f32.mrb[47].mxu0  ;;  %v1278_v23 = vadd.f32 %v3522_v40, %v3654_v24  ;;  %v1310_v40 = vadd.f32 %v3533_v63, %v3385_v55 }
 0x613   : > { %v1810_v60 = vmax.f32 %v1794_v51, 0.0  ;;  %v1780_v20 = vmul.f32 %v1717_v28, %v1300_v13  ;;  %v1273_v51 = vadd.f32 %v3654_v24, %v3524_v42  ;;  %v1288_v42 = vadd.f32 %v3526_v44, %v3654_v24 }
 0x614   : > { %1827 = vst [vmem:[%s3677_s14 + $0x18] sm:$0xff] %v1811_v54  ;;  %v1797_v26 = vadd.f32 %v1781_v56, %v1238_v14  ;;  %v1311_v14 = vadd.f32 %v3533_v63, %v3389_v57  ;;  %v1283_v57 = vadd.f32 %v3654_v24, %v3528_v62 }
 0x615   : > { %1826 = vst [vmem:[%s3677_s14 + $0x10] sm:$0xff] %v1810_v60  ;;  %v1796_v32 = vadd.f32 %v1780_v20, %v1233_v58  ;;  %v2468_v2 = vpop.f32.mrb[48].mxu0 }
 0x616   : > { %v1813_v4 = vmax.f32 %v1797_v26, 0.0  ;;  %v1783_v34 = vmul.f32 %v2468_v2, %v1303_v1  ;;  %v1727_v5 = vpop.f32.mrb[49].mxu0 }
 0x617   : > { %v1812_v25 = vmax.f32 %v1796_v32, 0.0  ;;  %v1782_v33 = vmul.f32 %v1727_v5, %v1302_v0 }
 0x618   : > { %1829 = vst [vmem:[%s3677_s14 + $0x28] sm:$0xff] %v1813_v4  ;;  %v1799_v31 = vadd.f32 %v1783_v34, %v1248_v3 }
 0x619   : > { %1828 = vst [vmem:[%s3677_s14 + $0x20] sm:$0xff] %v1812_v25  ;;  %v1798_v35 = vadd.f32 %v1782_v33, %v1243_v22  ;;  %v2471_v59 = vpop.f32.mrb[50].mxu0 }
 0x61a   : > { %v1815_v10 = vmax.f32 %v1799_v31, 0.0  ;;  %v1785_v15 = vmul.f32 %v2471_v59, %v1305_v6  ;;  %v1737_v27 = vpop.f32.mrb[51].mxu0 }
 0x61b   : > { %v1814_v30 = vmax.f32 %v1798_v35, 0.0  ;;  %v1784_v41 = vmul.f32 %v1737_v27, %v1304_v7 }
 0x61c   : > { %1831 = vst [vmem:[%s3677_s14 + $0x38] sm:$0xff] %v1815_v10  ;;  %v1801_v39 = vadd.f32 %v1785_v15, %v1258_v9 }
 0x61d   : > { %1830 = vst [vmem:[%s3677_s14 + $0x30] sm:$0xff] %v1814_v30  ;;  %v1800_v36 = vadd.f32 %v1784_v41, %v1253_v29  ;;  %v2474_v16 = vpop.f32.mrb[52].mxu0 }
 0x61e   : > { %v1817_v8 = vmax.f32 %v1801_v39, 0.0  ;;  %v1787_v37 = vmul.f32 %v2474_v16, %v1307_v11  ;;  %v1747_v19 = vpop.f32.mrb[53].mxu0 }
 0x61f   : > { %v1816_v43 = vmax.f32 %v1800_v36, 0.0  ;;  %v1786_v47 = vmul.f32 %v1747_v19, %v1306_v18 }
 0x620   : > { %1833 = vst [vmem:[%s3677_s14 + $0x48] sm:$0xff] %v1817_v8  ;;  %v1803_v45 = vadd.f32 %v1787_v37, %v1268_v17 }
 0x621   : > { %1832 = vst [vmem:[%s3677_s14 + $0x40] sm:$0xff] %v1816_v43  ;;  %v1802_v38 = vadd.f32 %v1786_v47, %v1263_v46  ;;  %v2477_v49 = vpop.f32.mrb[54].mxu0 }
 0x622   : > { %v1819_v21 = vmax.f32 %v1803_v45, 0.0  ;;  %v1789_v61 = vmul.f32 %v2477_v49, %v1309_v48  ;;  %v1757_v13 = vpop.f32.mrb[55].mxu0 }
 0x623   : > { %v1818_v53 = vmax.f32 %v1802_v38, 0.0  ;;  %v1788_v52 = vmul.f32 %v1757_v13, %v1308_v12 }
 0x624   : > { %1835 = vst [vmem:[%s3677_s14 + $0x58] sm:$0xff] %v1819_v21  ;;  %v1805_v50 = vadd.f32 %v1789_v61, %v1278_v23 }
 0x625   : > { %1834 = vst [vmem:[%s3677_s14 + $0x50] sm:$0xff] %v1818_v53  ;;  %v1804_v54 = vadd.f32 %v1788_v52, %v1273_v51  ;;  %v2480_v56 = vpop.f32.mrb[56].mxu0 }
 0x626   : > { %v1821_v28 = vmax.f32 %v1805_v50, 0.0  ;;  %v1791_v58 = vmul.f32 %v2480_v56, %v1311_v14  ;;  %v1767_v60 = vpop.f32.mrb[57].mxu0 }
 0x627   : > { %v1820_v20 = vmax.f32 %v1804_v54, 0.0  ;;  %v1790_v1 = vmul.f32 %v1767_v60, %v1310_v40 }
 0x628   : > { %1837 = vst [vmem:[%s3677_s14 + $0x68] sm:$0xff] %v1821_v28  ;;  %v1807_v55 = vadd.f32 %v1791_v58, %v1288_v42 }
 0x629   : > { %1836 = vst [vmem:[%s3677_s14 + $0x60] sm:$0xff] %v1820_v20  ;;  %v1806_v63 = vadd.f32 %v1790_v1, %v1283_v57 }
 0x62a   : > { %v1823_v26 = vmax.f32 %v1807_v55, 0.0 }
 0x62b   : > { %v1822_v44 = vmax.f32 %v1806_v63, 0.0 }
 0x62c   : > { %1839 = vst [vmem:[%s3677_s14 + $0x78] sm:$0xff] %v1823_v26 }
 0x62d   : > { %1838 = vst [vmem:[%s3677_s14 + $0x70] sm:$0xff] %v1822_v44 }
 0x62e   : > { %2863 = shalt.err (!%p2860_p9)
}
 0x62f   : > { %s2864_s17 = scalar_lea.hbm %s3744_s23, 2048  ;;  %s2868_s26 = scalar_lea.hbm %s3801_s8, 4096 }
 0x630   : > { %p2865_p2 = scmp.ne.s32.totalorder %s3744_s23, %s2864_s17  ;;  %p2869_p5 = scmp.lt.u32.totalorder %s3744_s23, %s3801_s8 }
 0x631   : > { %p2870_p10 = scmp.lt.u32.totalorder %s2868_s26, %s2864_s17  ;;  %p2872_p4 = scmp.lt.u32.totalorder %s2864_s17, %s3744_s23 }
 0x632   : > { %p2866_p0 = pnand %p2865_p2, %p3823_p7 }
 0x633   : > { %p2871_p12 = por %p2870_p10, %p2869_p5 }
 0x634   : > { %p2867_p3 = pneg %p2866_p0 }
 0x635   : > { %p2873_p8 = por %p2872_p4, %p2871_p12 }
 0x637   : > { %p2874_p11 = pnand %p2873_p8, %p2867_p3 }
 0x639   : > { %2877 = shalt.err (!%p2874_p11)
}
 0x63a   : > { %s2931_s11 = smov 128   ;;  %s2932_s14 = smov 8  }
 0x63b   : > { %2697 = dma.vmem_to_hbm [thread:$0]  (%p3823_p7), %s3746_s12, 2048, %s3744_s23, %s3752_s9, %s2931_s11, %s2931_s11, %s2932_s14  }
 0x63c PF: > { %s3824_s16 = sld [smem:[#allocation15_spill]]  ;;  %p2719_p13 = scmp.ge.s32.totalorder %s2920_s30, 2 }
 0x63d   : > { %s1869_s13 = sand.u32 1, %s2908_s27  }
 0x63e   : > { %s1870_s21 = scalar_lea.sflag [#allocation4], %s1869_s13 }
 0x642   : > { %p3825_p1 = scmp.ne.s32.totalorder %s3824_s16, 0 }
 0x644   : > { %p2710_p6 = pnand %p2719_p13, %p3825_p1 }
 0x646   : > { %2903 = dma.done.wait (!%p2710_p6), %s1870_s21, 2048  }
 0x647   : > { %2905 = vsyncadd (!%p2710_p6), %s1870_s21, 4294965248  ;;  %s3826_s30 = sld [smem:[#allocation13_spill]]  ;;  %s3827_s25 = sld [smem:[#allocation12_spill]] }
 0x648   : > { %s3828_s29 = sld [smem:[#allocation14_spill]]  ;;  %s3829_s27 = smov %s2912_s28 }
 0x64d   : > { %p20_p9 = scmp.ge.s32.totalorder %s3826_s30, 4   ;;  %s3830_s28 = smov %s3827_s25 }
 0x64f   :  { %22 = sbr.rel (!%p20_p9) target bundleno = 5 (0x5), region = 101 }
 0x656   :  { %1875 = vsyncpa [#allocation3], 1 }
 0x657   :  { %1877 = vsyncpa [#allocation3 + $0x1], 1 }
 0x658   :  { %1878 = vsyncpa [#allocation6], 1 }
 0x659   :  { %1879 = vsyncpa [#allocation4], 1 }
 0x65a   :  { %1881 = vsyncpa [#allocation4 + $0x1], 1 }

</bundles_post_ra>
